<compile_context>
chip_gen: v7x
topology: tpu7x:2x2x1
jax: 0.10.0
libtpu: 0.0.40
codegen_flags: <defaults>
</compile_context>

<pallas_src>
import functools
import math

import jax
import jax.numpy as jnp
from jax.experimental import pallas as pl
from jax.experimental.pallas import tpu as pltpu


# ----------------------------------------------------------------------------
# Fused decoder-layer kernel (one batch element per grid step)
# ----------------------------------------------------------------------------

def _decoder_layer_kernel(
    tgt_ref, mem_ref,
    wqkv_s_ref, bqkv_s_ref, wo_s_ref, bo_s_ref,                    # self-attn
    wq_c_ref, bq_c_ref, wkv_c_ref, bkv_c_ref, wo_c_ref, bo_c_ref,  # cross-attn
    w1_ref, b1_ref, w2_ref, b2_ref,                                # FFN
    g1_ref, be1_ref, g2_ref, be2_ref, g3_ref, be3_ref,             # LayerNorms
    o_ref,
    *, nhead, eps):
  L, D = tgt_ref.shape[1], tgt_ref.shape[2]
  H = nhead
  dk = D // H
  scale = 1.0 / math.sqrt(dk)
  f32 = jnp.float32
  mm_dtype = wqkv_s_ref.dtype      # bf16 in production, f32 for parity checks

  x = tgt_ref[0].astype(f32)       # [L, D] residual stream (f32)
  mem = mem_ref[0]                 # [S, D]

  def layer_norm(z, g_ref, b_ref):
    mu = jnp.mean(z, axis=-1, keepdims=True)
    var = jnp.mean((z - mu) * (z - mu), axis=-1, keepdims=True)
    return (z - mu) * jax.lax.rsqrt(var + eps) * g_ref[...] + b_ref[...]

  def mm(a, w_ref, b_ref):
    # bf16 (or f32) MXU matmul with f32 accumulation + f32 bias.
    return (jnp.dot(a.astype(mm_dtype), w_ref[...],
                    preferred_element_type=f32) + b_ref[...])

  def attn(q2, k2, v2, wo_ref, bo_ref):
    # All heads in one batched contraction each (no per-head loop / concat).
    Lq, Lkv = q2.shape[0], k2.shape[0]
    qh = q2.reshape(Lq, H, dk).astype(mm_dtype)
    kh = k2.reshape(Lkv, H, dk).astype(mm_dtype)
    vh = v2.reshape(Lkv, H, dk).astype(mm_dtype)
    s = jnp.einsum("lhd,shd->hls", qh, kh,
                   preferred_element_type=f32) * scale          # [H, Lq, Lkv]
    s = s - jnp.max(s, axis=-1, keepdims=True)                  # f32 softmax
    p = jnp.exp(s)
    p = p * pl.reciprocal(jnp.sum(p, axis=-1, keepdims=True), approx=False)
    o = jnp.einsum("hls,shd->lhd", p.astype(mm_dtype), vh,
                   preferred_element_type=f32)                  # [Lq, H, dk]
    return mm(o.reshape(Lq, D), wo_ref, bo_ref)

  # ---- self-attention (fused QKV projection: one [L,D]x[D,3D] MXU stream) ---
  qkv = mm(x, wqkv_s_ref, bqkv_s_ref)
  sa = attn(qkv[:, :D], qkv[:, D:2 * D], qkv[:, 2 * D:], wo_s_ref, bo_s_ref)
  x = layer_norm(x + sa, g1_ref, be1_ref)

  # ---- cross-attention (fused KV projection: one [S,D]x[D,2D]) --------------
  q_c = mm(x, wq_c_ref, bq_c_ref)
  kv = mm(mem.astype(f32), wkv_c_ref, bkv_c_ref)
  ca = attn(q_c, kv[:, :D], kv[:, D:], wo_c_ref, bo_c_ref)
  x = layer_norm(x + ca, g2_ref, be2_ref)

  # ---- feed-forward ----------------------------------------------------------
  h1 = jnp.maximum(mm(x, w1_ref, b1_ref), 0.0)
  ff = mm(h1, w2_ref, b2_ref)
  x = layer_norm(x + ff, g3_ref, be3_ref)

  o_ref[0] = x.astype(o_ref.dtype)


# Kernel-argument order for the weight/bias operands.
_WEIGHT_NAMES = (
    "sa_wqkv", "sa_bqkv", "sa_wo", "sa_bo",
    "ca_wq", "ca_bq", "ca_wkv", "ca_bkv", "ca_wo", "ca_bo",
    "w1", "b1", "w2", "b2",
    "norm1_g", "norm1_b", "norm2_g", "norm2_b", "norm3_g", "norm3_b",
)
# Matmul weight matrices (cast to the MXU dtype); biases/norm params stay f32.
_MATMUL_WEIGHTS = frozenset(
    {"sa_wqkv", "sa_wo", "ca_wq", "ca_wkv", "ca_wo", "w1", "w2"})


def transformer_decoder_layer_bm(tgt_bm, mem_bm, params, nhead, *,
                                 eps=1e-5, matmul_dtype=jnp.bfloat16):
  """Batch-major decoder layer.  tgt_bm: [B, L, D], mem_bm: [B, S, D]."""
  B, L, D = tgt_bm.shape
  S = mem_bm.shape[1]

  weight_args = []
  for name in _WEIGHT_NAMES:
    w = params[name]
    if name in _MATMUL_WEIGHTS:
      w = w.astype(matmul_dtype)       # halves weight DMA bytes in bf16 mode
    weight_args.append(w)

  def resident(arr):
    # Same block for every grid index -> loaded once, stays VMEM-resident.
    idx = (0,) * arr.ndim
    return pl.BlockSpec(arr.shape, lambda b, idx=idx: idx)

  in_specs = [
      pl.BlockSpec((1, L, D), lambda b: (b, 0, 0)),   # tgt tile (pipelined)
      pl.BlockSpec((1, S, D), lambda b: (b, 0, 0)),   # memory tile (pipelined)
  ] + [resident(w) for w in weight_args]

  kern = functools.partial(_decoder_layer_kernel, nhead=nhead, eps=eps)
  return pl.pallas_call(
      kern,
      out_shape=jax.ShapeDtypeStruct((B, L, D), jnp.float32),
      grid_spec=pltpu.PrefetchScalarGridSpec(
          num_scalar_prefetch=0,
          grid=(B,),
          in_specs=in_specs,
          out_specs=pl.BlockSpec((1, L, D), lambda b: (b, 0, 0))),
      compiler_params=pltpu.CompilerParams(
          # batch axis is independent -> sharded across v7x's two TensorCores
          dimension_semantics=("parallel",)),
  )(tgt_bm, mem_bm, *weight_args)


def transformer_decoder(tgt, memory, layer_params, nhead, *,
                        eps=1e-5, matmul_dtype=jnp.bfloat16):
  """Stack of decoder layers.  tgt: [L, B, D], memory: [S, B, D] -> [L, B, D].

  The [L,B,D] <-> [B,L,D] layout change is done once for the whole stack;
  activations stay batch-major between layers (no per-layer HBM transposes).
  """
  x = jnp.transpose(tgt, (1, 0, 2))        # [B, L, D]
  mem = jnp.transpose(memory, (1, 0, 2))   # [B, S, D]
  for p in layer_params:
    x = transformer_decoder_layer_bm(x, mem, p, nhead,
                                     eps=eps, matmul_dtype=matmul_dtype)
  return jnp.transpose(x, (1, 0, 2))


# ----------------------------------------------------------------------------
# Pure-JAX reference (for correctness check)
# ----------------------------------------------------------------------------

def _ref_mha(xq, xkv, wq, bq, wk, bk, wv, bv, wo, bo, nhead):
  Lq, B, D = xq.shape
  Lkv = xkv.shape[0]
  dk = D // nhead
  q = xq @ wq + bq
  k = xkv @ wk + bk
  v = xkv @ wv + bv
  qh = q.reshape(Lq, B, nhead, dk).transpose(1, 2, 0, 3)
  kh = k.reshape(Lkv, B, nhead, dk).transpose(1, 2, 0, 3)
  vh = v.reshape(Lkv, B, nhead, dk).transpose(1, 2, 0, 3)
  s = jnp.einsum("bhld,bhsd->bhls", qh, kh) / (dk ** 0.5)
  p = jax.nn.softmax(s, axis=-1)
  o = jnp.einsum("bhls,bhsd->bhld", p, vh)
  o = o.transpose(2, 0, 1, 3).reshape(Lq, B, D)
  return o @ wo + bo


def _ref_ln(x, g, b, eps=1e-5):
  m = jnp.mean(x, axis=-1, keepdims=True)
  v = jnp.mean((x - m) ** 2, axis=-1, keepdims=True)
  return (x - m) * jax.lax.rsqrt(v + eps) * g + b


def ref_decoder_layer(tgt, memory, p, nhead):
  D = tgt.shape[-1]
  sa_wq, sa_wk, sa_wv = p["sa_wqkv"][:, :D], p["sa_wqkv"][:, D:2 * D], p["sa_wqkv"][:, 2 * D:]
  sa_bq, sa_bk, sa_bv = p["sa_bqkv"][:, :D], p["sa_bqkv"][:, D:2 * D], p["sa_bqkv"][:, 2 * D:]
  ca_wk, ca_wv = p["ca_wkv"][:, :D], p["ca_wkv"][:, D:]
  ca_bk, ca_bv = p["ca_bkv"][:, :D], p["ca_bkv"][:, D:]

  x = _ref_ln(tgt + _ref_mha(tgt, tgt, sa_wq, sa_bq, sa_wk, sa_bk, sa_wv, sa_bv,
                             p["sa_wo"], p["sa_bo"], nhead),
              p["norm1_g"], p["norm1_b"])
  x = _ref_ln(x + _ref_mha(x, memory, p["ca_wq"], p["ca_bq"], ca_wk, ca_bk,
                           ca_wv, ca_bv, p["ca_wo"], p["ca_bo"], nhead),
              p["norm2_g"], p["norm2_b"])
  ff = jnp.maximum(x @ p["w1"] + p["b1"], 0.0) @ p["w2"] + p["b2"]
  return _ref_ln(x + ff, p["norm3_g"], p["norm3_b"])


def ref_decoder(tgt, memory, layer_params, nhead):
  x = tgt
  for p in layer_params:
    x = ref_decoder_layer(x, memory, p, nhead)
  return x


# ----------------------------------------------------------------------------
# main
# ----------------------------------------------------------------------------

def _make_layer_params(key, d_model, dff):
  ks = jax.random.split(key, 16)

  def w(i, shape, scale=0.05):
    return jax.random.normal(ks[i], shape, jnp.float32) * scale

  return {
      "sa_wqkv": w(0, (d_model, 3 * d_model)),
      "sa_bqkv": w(1, (1, 3 * d_model)),
      "sa_wo": w(2, (d_model, d_model)),
      "sa_bo": w(3, (1, d_model)),
      "ca_wq": w(4, (d_model, d_model)),
      "ca_bq": w(5, (1, d_model)),
      "ca_wkv": w(6, (d_model, 2 * d_model)),
      "ca_bkv": w(7, (1, 2 * d_model)),
      "ca_wo": w(8, (d_model, d_model)),
      "ca_bo": w(9, (1, d_model)),
      "w1": w(10, (d_model, dff)),
      "b1": w(11, (1, dff)),
      "w2": w(12, (dff, d_model)),
      "b2": w(13, (1, d_model)),
      "norm1_g": 1.0 + 0.1 * jax.random.normal(ks[14], (1, d_model), jnp.float32),
      "norm1_b": 0.1 * jax.random.normal(ks[15], (1, d_model), jnp.float32),
      "norm2_g": jnp.ones((1, d_model), jnp.float32),
      "norm2_b": jnp.zeros((1, d_model), jnp.float32),
      "norm3_g": jnp.ones((1, d_model), jnp.float32),
      "norm3_b": jnp.zeros((1, d_model), jnp.float32),
  }


if __name__ == "__main__":
  d_model = 32
  nhead = 4
  dim_feedforward = 64
  tgt_len, src_len, batch = 8, 16, 2    # src_len = H*W of a 4x4 feature map
  num_layers = 2                        # MaskHead uses num_layers=2

  key = jax.random.PRNGKey(0)
  k_layers, k_tgt, k_mem = jax.random.split(key, 3)
  layer_params = [_make_layer_params(k, d_model, dim_feedforward)
                  for k in jax.random.split(k_layers, num_layers)]

  tgt = jax.random.normal(k_tgt, (tgt_len, batch, d_model), jnp.float32)
  memory = jax.random.normal(k_mem, (src_len, batch, d_model), jnp.float32)

  ref = ref_decoder(tgt, memory, layer_params, nhead)

  # f32 matmul path: bit-close parity with the reference.
  out_f32 = jax.block_until_ready(
      transformer_decoder(tgt, memory, layer_params, nhead,
                          matmul_dtype=jnp.float32))
  assert out_f32.shape == (tgt_len, batch, d_model)
  assert jnp.allclose(out_f32, ref, atol=2e-3, rtol=2e-3), "f32 mismatch vs reference"

  # production path: bf16 MXU matmuls with f32 accumulation / f32 norm+softmax.
  out_bf16 = jax.block_until_ready(
      transformer_decoder(tgt, memory, layer_params, nhead,
                          matmul_dtype=jnp.bfloat16))
  assert out_bf16.shape == (tgt_len, batch, d_model)
  assert jnp.allclose(out_bf16, ref, atol=5e-2, rtol=5e-2), "bf16 mismatch vs reference"

  print("KERNEL_OK")
</pallas_src>

<mosaic_0001>
module attributes {stable_mosaic.version = 11 : i64} {
  func.func @_decoder_layer_kernel(%arg0: i32, %arg1: memref<1x8x32xf32, #tpu.memory_space<vmem>>, %arg2: memref<1x16x32xf32, #tpu.memory_space<vmem>>, %arg3: memref<32x96xf32, #tpu.memory_space<vmem>>, %arg4: memref<1x96xf32, #tpu.memory_space<vmem>>, %arg5: memref<32x32xf32, #tpu.memory_space<vmem>>, %arg6: memref<1x32xf32, #tpu.memory_space<vmem>>, %arg7: memref<32x32xf32, #tpu.memory_space<vmem>>, %arg8: memref<1x32xf32, #tpu.memory_space<vmem>>, %arg9: memref<32x64xf32, #tpu.memory_space<vmem>>, %arg10: memref<1x64xf32, #tpu.memory_space<vmem>>, %arg11: memref<32x32xf32, #tpu.memory_space<vmem>>, %arg12: memref<1x32xf32, #tpu.memory_space<vmem>>, %arg13: memref<32x64xf32, #tpu.memory_space<vmem>>, %arg14: memref<1x64xf32, #tpu.memory_space<vmem>>, %arg15: memref<64x32xf32, #tpu.memory_space<vmem>>, %arg16: memref<1x32xf32, #tpu.memory_space<vmem>>, %arg17: memref<1x32xf32, #tpu.memory_space<vmem>>, %arg18: memref<1x32xf32, #tpu.memory_space<vmem>>, %arg19: memref<1x32xf32, #tpu.memory_space<vmem>>, %arg20: memref<1x32xf32, #tpu.memory_space<vmem>>, %arg21: memref<1x32xf32, #tpu.memory_space<vmem>>, %arg22: memref<1x32xf32, #tpu.memory_space<vmem>>, %arg23: memref<1x8x32xf32, #tpu.memory_space<vmem>>) attributes {dimension_semantics = [#tpu.dimension_semantics<parallel>], iteration_bounds = array<i64: 2>, scalar_prefetch = 0 : i64, scratch_operands = 0 : i64, tpu.core_type = #tpu.core_type<tc>, window_params = [{transform_indices = @transform_0, window_bounds = array<i64: 1, 8, 32>}, {transform_indices = @transform_1, window_bounds = array<i64: 1, 16, 32>}, {pipeline_mode = #tpu.pipeline_mode<synchronous>, transform_indices = @transform_2, window_bounds = array<i64: 32, 96>}, {pipeline_mode = #tpu.pipeline_mode<synchronous>, transform_indices = @transform_3, window_bounds = array<i64: 1, 96>}, {pipeline_mode = #tpu.pipeline_mode<synchronous>, transform_indices = @transform_4, window_bounds = array<i64: 32, 32>}, {pipeline_mode = #tpu.pipeline_mode<synchronous>, transform_indices = @transform_5, window_bounds = array<i64: 1, 32>}, {pipeline_mode = #tpu.pipeline_mode<synchronous>, transform_indices = @transform_6, window_bounds = array<i64: 32, 32>}, {pipeline_mode = #tpu.pipeline_mode<synchronous>, transform_indices = @transform_7, window_bounds = array<i64: 1, 32>}, {pipeline_mode = #tpu.pipeline_mode<synchronous>, transform_indices = @transform_8, window_bounds = array<i64: 32, 64>}, {pipeline_mode = #tpu.pipeline_mode<synchronous>, transform_indices = @transform_9, window_bounds = array<i64: 1, 64>}, {pipeline_mode = #tpu.pipeline_mode<synchronous>, transform_indices = @transform_10, window_bounds = array<i64: 32, 32>}, {pipeline_mode = #tpu.pipeline_mode<synchronous>, transform_indices = @transform_11, window_bounds = array<i64: 1, 32>}, {pipeline_mode = #tpu.pipeline_mode<synchronous>, transform_indices = @transform_12, window_bounds = array<i64: 32, 64>}, {pipeline_mode = #tpu.pipeline_mode<synchronous>, transform_indices = @transform_13, window_bounds = array<i64: 1, 64>}, {pipeline_mode = #tpu.pipeline_mode<synchronous>, transform_indices = @transform_14, window_bounds = array<i64: 64, 32>}, {pipeline_mode = #tpu.pipeline_mode<synchronous>, transform_indices = @transform_15, window_bounds = array<i64: 1, 32>}, {pipeline_mode = #tpu.pipeline_mode<synchronous>, transform_indices = @transform_16, window_bounds = array<i64: 1, 32>}, {pipeline_mode = #tpu.pipeline_mode<synchronous>, transform_indices = @transform_17, window_bounds = array<i64: 1, 32>}, {pipeline_mode = #tpu.pipeline_mode<synchronous>, transform_indices = @transform_18, window_bounds = array<i64: 1, 32>}, {pipeline_mode = #tpu.pipeline_mode<synchronous>, transform_indices = @transform_19, window_bounds = array<i64: 1, 32>}, {pipeline_mode = #tpu.pipeline_mode<synchronous>, transform_indices = @transform_20, window_bounds = array<i64: 1, 32>}, {pipeline_mode = #tpu.pipeline_mode<synchronous>, transform_indices = @transform_21, window_bounds = array<i64: 1, 32>}, {transform_indices = @transform_22, window_bounds = array<i64: 1, 8, 32>}]} {
    %c0 = arith.constant 0 : index
    %c0_0 = arith.constant 0 : index
    %c0_1 = arith.constant 0 : index
    %0 = vector.load %arg1[%c0, %c0_0, %c0_1] : memref<1x8x32xf32, #tpu.memory_space<vmem>>, vector<1x8x32xf32>
    %1 = vector.shape_cast %0 : vector<1x8x32xf32> to vector<8x32xf32>
    %c0_2 = arith.constant 0 : index
    %c0_3 = arith.constant 0 : index
    %c0_4 = arith.constant 0 : index
    %2 = vector.load %arg2[%c0_2, %c0_3, %c0_4] : memref<1x16x32xf32, #tpu.memory_space<vmem>>, vector<1x16x32xf32>
    %3 = vector.shape_cast %2 : vector<1x16x32xf32> to vector<16x32xf32>
    %c0_5 = arith.constant 0 : index
    %c0_6 = arith.constant 0 : index
    %4 = vector.load %arg3[%c0_5, %c0_6] : memref<32x96xf32, #tpu.memory_space<vmem>>, vector<32x96xf32>
    %cst = arith.constant dense<0.000000e+00> : vector<8x96xf32>
    %5 = tpu.matmul %1, %4, %cst {dimension_numbers = #tpu.dot_dimension_numbers<[1], [0], [0], [1], [0, 0, 1, 1], [], []>} : vector<8x32xf32>, vector<32x96xf32>, vector<8x96xf32> -> vector<8x96xf32>
    %c0_7 = arith.constant 0 : index
    %c0_8 = arith.constant 0 : index
    %6 = vector.load %arg4[%c0_7, %c0_8] : memref<1x96xf32, #tpu.memory_space<vmem>>, vector<1x96xf32>
    %7 = vector.broadcast %6 : vector<1x96xf32> to vector<8x96xf32>
    %8 = arith.addf %5, %7 : vector<8x96xf32>
    %9 = vector.extract_strided_slice %8 {offsets = [0, 0], sizes = [8, 32], strides = [1, 1]} : vector<8x96xf32> to vector<8x32xf32>
    %10 = vector.extract_strided_slice %8 {offsets = [0, 32], sizes = [8, 32], strides = [1, 1]} : vector<8x96xf32> to vector<8x32xf32>
    %11 = vector.extract_strided_slice %8 {offsets = [0, 64], sizes = [8, 32], strides = [1, 1]} : vector<8x96xf32> to vector<8x32xf32>
    %12 = vector.shape_cast %9 : vector<8x32xf32> to vector<8x4x8xf32>
    %13 = vector.shape_cast %10 : vector<8x32xf32> to vector<8x4x8xf32>
    %14 = vector.shape_cast %11 : vector<8x32xf32> to vector<8x4x8xf32>
    "tpu.trace_start"() <{level = 10 : i32, message = "lhd,shd->hls"}> : () -> ()
    %cst_9 = arith.constant dense<0.000000e+00> : vector<4x8x8xf32>
    %15 = tpu.matmul %12, %13, %cst_9 {dimension_numbers = #tpu.dot_dimension_numbers<[2], [2], [0], [0], [0, 1, 0, 0, 1, 0], [1], [1]>} : vector<8x4x8xf32>, vector<8x4x8xf32>, vector<4x8x8xf32> -> vector<4x8x8xf32>
    "tpu.trace_stop"() : () -> ()
    %cst_10 = arith.constant 0.353553385 : f32
    %16 = vector.broadcast %cst_10 : f32 to vector<4x8x8xf32>
    %17 = arith.mulf %15, %16 : vector<4x8x8xf32>
    %cst_11 = arith.constant dense<0xFF800000> : vector<4x8xf32>
    %18 = vector.multi_reduction <maximumf>, %17, %cst_11 [2] : vector<4x8x8xf32> to vector<4x8xf32>
    %19 = vector.shape_cast %18 : vector<4x8xf32> to vector<4x8x1xf32>
    %20 = vector.broadcast %19 : vector<4x8x1xf32> to vector<4x8x8xf32>
    %21 = arith.subf %17, %20 : vector<4x8x8xf32>
    %22 = math.exp %21 : vector<4x8x8xf32>
    %cst_12 = arith.constant dense<0.000000e+00> : vector<4x8xf32>
    %23 = vector.multi_reduction <add>, %22, %cst_12 [2] : vector<4x8x8xf32> to vector<4x8xf32>
    %24 = vector.shape_cast %23 : vector<4x8xf32> to vector<4x8x1xf32>
    %25 = tpu.reciprocal %24 : vector<4x8x1xf32> -> vector<4x8x1xf32>
    %26 = vector.broadcast %25 : vector<4x8x1xf32> to vector<4x8x8xf32>
    %27 = arith.mulf %22, %26 : vector<4x8x8xf32>
    "tpu.trace_start"() <{level = 10 : i32, message = "hls,shd->lhd"}> : () -> ()
    %cst_13 = arith.constant dense<0.000000e+00> : vector<4x8x8xf32>
    %28 = tpu.matmul %14, %27, %cst_13 {dimension_numbers = #tpu.dot_dimension_numbers<[0], [2], [2], [1], [0, 1, 0, 2, 1, 1], [1], [0]>} : vector<8x4x8xf32>, vector<4x8x8xf32>, vector<4x8x8xf32> -> vector<4x8x8xf32>
    %29 = tpu.transpose %28, [2, 0, 1] : vector<4x8x8xf32> -> vector<8x4x8xf32>
    "tpu.trace_stop"() : () -> ()
    %30 = vector.shape_cast %29 : vector<8x4x8xf32> to vector<8x32xf32>
    %c0_14 = arith.constant 0 : index
    %c0_15 = arith.constant 0 : index
    %31 = vector.load %arg5[%c0_14, %c0_15] : memref<32x32xf32, #tpu.memory_space<vmem>>, vector<32x32xf32>
    %cst_16 = arith.constant dense<0.000000e+00> : vector<8x32xf32>
    %32 = tpu.matmul %30, %31, %cst_16 {dimension_numbers = #tpu.dot_dimension_numbers<[1], [0], [0], [1], [0, 0, 1, 1], [], []>} : vector<8x32xf32>, vector<32x32xf32>, vector<8x32xf32> -> vector<8x32xf32>
    %c0_17 = arith.constant 0 : index
    %c0_18 = arith.constant 0 : index
    %33 = vector.load %arg6[%c0_17, %c0_18] : memref<1x32xf32, #tpu.memory_space<vmem>>, vector<1x32xf32>
    %34 = vector.broadcast %33 : vector<1x32xf32> to vector<8x32xf32>
    %35 = arith.addf %32, %34 : vector<8x32xf32>
    %36 = arith.addf %1, %35 : vector<8x32xf32>
    %cst_19 = arith.constant dense<0.000000e+00> : vector<8xf32>
    %37 = vector.multi_reduction <add>, %36, %cst_19 [1] : vector<8x32xf32> to vector<8xf32>
    %38 = vector.shape_cast %37 : vector<8xf32> to vector<8x1xf32>
    %cst_20 = arith.constant 3.200000e+01 : f32
    %39 = vector.broadcast %cst_20 : f32 to vector<8x1xf32>
    %40 = arith.divf %38, %39 : vector<8x1xf32>
    %41 = vector.broadcast %40 : vector<8x1xf32> to vector<8x32xf32>
    %42 = arith.subf %36, %41 : vector<8x32xf32>
    %43 = vector.broadcast %40 : vector<8x1xf32> to vector<8x32xf32>
    %44 = arith.subf %36, %43 : vector<8x32xf32>
    %45 = arith.mulf %42, %44 : vector<8x32xf32>
    %cst_21 = arith.constant dense<0.000000e+00> : vector<8xf32>
    %46 = vector.multi_reduction <add>, %45, %cst_21 [1] : vector<8x32xf32> to vector<8xf32>
    %47 = vector.shape_cast %46 : vector<8xf32> to vector<8x1xf32>
    %cst_22 = arith.constant 3.200000e+01 : f32
    %48 = vector.broadcast %cst_22 : f32 to vector<8x1xf32>
    %49 = arith.divf %47, %48 : vector<8x1xf32>
    %50 = vector.broadcast %40 : vector<8x1xf32> to vector<8x32xf32>
    %51 = arith.subf %36, %50 : vector<8x32xf32>
    %cst_23 = arith.constant 9.99999974E-6 : f32
    %52 = vector.broadcast %cst_23 : f32 to vector<8x1xf32>
    %53 = arith.addf %49, %52 : vector<8x1xf32>
    %54 = math.rsqrt %53 : vector<8x1xf32>
    %55 = vector.broadcast %54 : vector<8x1xf32> to vector<8x32xf32>
    %56 = arith.mulf %51, %55 : vector<8x32xf32>
    %c0_24 = arith.constant 0 : index
    %c0_25 = arith.constant 0 : index
    %57 = vector.load %arg17[%c0_24, %c0_25] : memref<1x32xf32, #tpu.memory_space<vmem>>, vector<1x32xf32>
    %58 = vector.broadcast %57 : vector<1x32xf32> to vector<8x32xf32>
    %59 = arith.mulf %56, %58 : vector<8x32xf32>
    %c0_26 = arith.constant 0 : index
    %c0_27 = arith.constant 0 : index
    %60 = vector.load %arg18[%c0_26, %c0_27] : memref<1x32xf32, #tpu.memory_space<vmem>>, vector<1x32xf32>
    %61 = vector.broadcast %60 : vector<1x32xf32> to vector<8x32xf32>
    %62 = arith.addf %59, %61 : vector<8x32xf32>
    %c0_28 = arith.constant 0 : index
    %c0_29 = arith.constant 0 : index
    %63 = vector.load %arg7[%c0_28, %c0_29] : memref<32x32xf32, #tpu.memory_space<vmem>>, vector<32x32xf32>
    %cst_30 = arith.constant dense<0.000000e+00> : vector<8x32xf32>
    %64 = tpu.matmul %62, %63, %cst_30 {dimension_numbers = #tpu.dot_dimension_numbers<[1], [0], [0], [1], [0, 0, 1, 1], [], []>} : vector<8x32xf32>, vector<32x32xf32>, vector<8x32xf32> -> vector<8x32xf32>
    %c0_31 = arith.constant 0 : index
    %c0_32 = arith.constant 0 : index
    %65 = vector.load %arg8[%c0_31, %c0_32] : memref<1x32xf32, #tpu.memory_space<vmem>>, vector<1x32xf32>
    %66 = vector.broadcast %65 : vector<1x32xf32> to vector<8x32xf32>
    %67 = arith.addf %64, %66 : vector<8x32xf32>
    %c0_33 = arith.constant 0 : index
    %c0_34 = arith.constant 0 : index
    %68 = vector.load %arg9[%c0_33, %c0_34] : memref<32x64xf32, #tpu.memory_space<vmem>>, vector<32x64xf32>
    %cst_35 = arith.constant dense<0.000000e+00> : vector<16x64xf32>
    %69 = tpu.matmul %3, %68, %cst_35 {dimension_numbers = #tpu.dot_dimension_numbers<[1], [0], [0], [1], [0, 0, 1, 1], [], []>} : vector<16x32xf32>, vector<32x64xf32>, vector<16x64xf32> -> vector<16x64xf32>
    %c0_36 = arith.constant 0 : index
    %c0_37 = arith.constant 0 : index
    %70 = vector.load %arg10[%c0_36, %c0_37] : memref<1x64xf32, #tpu.memory_space<vmem>>, vector<1x64xf32>
    %71 = vector.broadcast %70 : vector<1x64xf32> to vector<16x64xf32>
    %72 = arith.addf %69, %71 : vector<16x64xf32>
    %73 = vector.extract_strided_slice %72 {offsets = [0, 0], sizes = [16, 32], strides = [1, 1]} : vector<16x64xf32> to vector<16x32xf32>
    %74 = vector.extract_strided_slice %72 {offsets = [0, 32], sizes = [16, 32], strides = [1, 1]} : vector<16x64xf32> to vector<16x32xf32>
    %75 = vector.shape_cast %67 : vector<8x32xf32> to vector<8x4x8xf32>
    %76 = vector.shape_cast %73 : vector<16x32xf32> to vector<16x4x8xf32>
    %77 = vector.shape_cast %74 : vector<16x32xf32> to vector<16x4x8xf32>
    "tpu.trace_start"() <{level = 10 : i32, message = "lhd,shd->hls"}> : () -> ()
    %cst_38 = arith.constant dense<0.000000e+00> : vector<4x8x16xf32>
    %78 = tpu.matmul %75, %76, %cst_38 {dimension_numbers = #tpu.dot_dimension_numbers<[2], [2], [0], [0], [0, 1, 0, 0, 1, 0], [1], [1]>} : vector<8x4x8xf32>, vector<16x4x8xf32>, vector<4x8x16xf32> -> vector<4x8x16xf32>
    "tpu.trace_stop"() : () -> ()
    %cst_39 = arith.constant 0.353553385 : f32
    %79 = vector.broadcast %cst_39 : f32 to vector<4x8x16xf32>
    %80 = arith.mulf %78, %79 : vector<4x8x16xf32>
    %cst_40 = arith.constant dense<0xFF800000> : vector<4x8xf32>
    %81 = vector.multi_reduction <maximumf>, %80, %cst_40 [2] : vector<4x8x16xf32> to vector<4x8xf32>
    %82 = vector.shape_cast %81 : vector<4x8xf32> to vector<4x8x1xf32>
    %83 = vector.broadcast %82 : vector<4x8x1xf32> to vector<4x8x16xf32>
    %84 = arith.subf %80, %83 : vector<4x8x16xf32>
    %85 = math.exp %84 : vector<4x8x16xf32>
    %cst_41 = arith.constant dense<0.000000e+00> : vector<4x8xf32>
    %86 = vector.multi_reduction <add>, %85, %cst_41 [2] : vector<4x8x16xf32> to vector<4x8xf32>
    %87 = vector.shape_cast %86 : vector<4x8xf32> to vector<4x8x1xf32>
    %88 = tpu.reciprocal %87 : vector<4x8x1xf32> -> vector<4x8x1xf32>
    %89 = vector.broadcast %88 : vector<4x8x1xf32> to vector<4x8x16xf32>
    %90 = arith.mulf %85, %89 : vector<4x8x16xf32>
    "tpu.trace_start"() <{level = 10 : i32, message = "hls,shd->lhd"}> : () -> ()
    %cst_42 = arith.constant dense<0.000000e+00> : vector<4x8x8xf32>
    %91 = tpu.matmul %77, %90, %cst_42 {dimension_numbers = #tpu.dot_dimension_numbers<[0], [2], [2], [1], [0, 1, 0, 2, 1, 1], [1], [0]>} : vector<16x4x8xf32>, vector<4x8x16xf32>, vector<4x8x8xf32> -> vector<4x8x8xf32>
    %92 = tpu.transpose %91, [2, 0, 1] : vector<4x8x8xf32> -> vector<8x4x8xf32>
    "tpu.trace_stop"() : () -> ()
    %93 = vector.shape_cast %92 : vector<8x4x8xf32> to vector<8x32xf32>
    %c0_43 = arith.constant 0 : index
    %c0_44 = arith.constant 0 : index
    %94 = vector.load %arg11[%c0_43, %c0_44] : memref<32x32xf32, #tpu.memory_space<vmem>>, vector<32x32xf32>
    %cst_45 = arith.constant dense<0.000000e+00> : vector<8x32xf32>
    %95 = tpu.matmul %93, %94, %cst_45 {dimension_numbers = #tpu.dot_dimension_numbers<[1], [0], [0], [1], [0, 0, 1, 1], [], []>} : vector<8x32xf32>, vector<32x32xf32>, vector<8x32xf32> -> vector<8x32xf32>
    %c0_46 = arith.constant 0 : index
    %c0_47 = arith.constant 0 : index
    %96 = vector.load %arg12[%c0_46, %c0_47] : memref<1x32xf32, #tpu.memory_space<vmem>>, vector<1x32xf32>
    %97 = vector.broadcast %96 : vector<1x32xf32> to vector<8x32xf32>
    %98 = arith.addf %95, %97 : vector<8x32xf32>
    %99 = arith.addf %62, %98 : vector<8x32xf32>
    %cst_48 = arith.constant dense<0.000000e+00> : vector<8xf32>
    %100 = vector.multi_reduction <add>, %99, %cst_48 [1] : vector<8x32xf32> to vector<8xf32>
    %101 = vector.shape_cast %100 : vector<8xf32> to vector<8x1xf32>
    %cst_49 = arith.constant 3.200000e+01 : f32
    %102 = vector.broadcast %cst_49 : f32 to vector<8x1xf32>
    %103 = arith.divf %101, %102 : vector<8x1xf32>
    %104 = vector.broadcast %103 : vector<8x1xf32> to vector<8x32xf32>
    %105 = arith.subf %99, %104 : vector<8x32xf32>
    %106 = vector.broadcast %103 : vector<8x1xf32> to vector<8x32xf32>
    %107 = arith.subf %99, %106 : vector<8x32xf32>
    %108 = arith.mulf %105, %107 : vector<8x32xf32>
    %cst_50 = arith.constant dense<0.000000e+00> : vector<8xf32>
    %109 = vector.multi_reduction <add>, %108, %cst_50 [1] : vector<8x32xf32> to vector<8xf32>
    %110 = vector.shape_cast %109 : vector<8xf32> to vector<8x1xf32>
    %cst_51 = arith.constant 3.200000e+01 : f32
    %111 = vector.broadcast %cst_51 : f32 to vector<8x1xf32>
    %112 = arith.divf %110, %111 : vector<8x1xf32>
    %113 = vector.broadcast %103 : vector<8x1xf32> to vector<8x32xf32>
    %114 = arith.subf %99, %113 : vector<8x32xf32>
    %cst_52 = arith.constant 9.99999974E-6 : f32
    %115 = vector.broadcast %cst_52 : f32 to vector<8x1xf32>
    %116 = arith.addf %112, %115 : vector<8x1xf32>
    %117 = math.rsqrt %116 : vector<8x1xf32>
    %118 = vector.broadcast %117 : vector<8x1xf32> to vector<8x32xf32>
    %119 = arith.mulf %114, %118 : vector<8x32xf32>
    %c0_53 = arith.constant 0 : index
    %c0_54 = arith.constant 0 : index
    %120 = vector.load %arg19[%c0_53, %c0_54] : memref<1x32xf32, #tpu.memory_space<vmem>>, vector<1x32xf32>
    %121 = vector.broadcast %120 : vector<1x32xf32> to vector<8x32xf32>
    %122 = arith.mulf %119, %121 : vector<8x32xf32>
    %c0_55 = arith.constant 0 : index
    %c0_56 = arith.constant 0 : index
    %123 = vector.load %arg20[%c0_55, %c0_56] : memref<1x32xf32, #tpu.memory_space<vmem>>, vector<1x32xf32>
    %124 = vector.broadcast %123 : vector<1x32xf32> to vector<8x32xf32>
    %125 = arith.addf %122, %124 : vector<8x32xf32>
    %c0_57 = arith.constant 0 : index
    %c0_58 = arith.constant 0 : index
    %126 = vector.load %arg13[%c0_57, %c0_58] : memref<32x64xf32, #tpu.memory_space<vmem>>, vector<32x64xf32>
    %cst_59 = arith.constant dense<0.000000e+00> : vector<8x64xf32>
    %127 = tpu.matmul %125, %126, %cst_59 {dimension_numbers = #tpu.dot_dimension_numbers<[1], [0], [0], [1], [0, 0, 1, 1], [], []>} : vector<8x32xf32>, vector<32x64xf32>, vector<8x64xf32> -> vector<8x64xf32>
    %c0_60 = arith.constant 0 : index
    %c0_61 = arith.constant 0 : index
    %128 = vector.load %arg14[%c0_60, %c0_61] : memref<1x64xf32, #tpu.memory_space<vmem>>, vector<1x64xf32>
    %129 = vector.broadcast %128 : vector<1x64xf32> to vector<8x64xf32>
    %130 = arith.addf %127, %129 : vector<8x64xf32>
    %cst_62 = arith.constant 0.000000e+00 : f32
    %131 = vector.broadcast %cst_62 : f32 to vector<8x64xf32>
    %132 = arith.maximumf %130, %131 : vector<8x64xf32>
    %c0_63 = arith.constant 0 : index
    %c0_64 = arith.constant 0 : index
    %133 = vector.load %arg15[%c0_63, %c0_64] : memref<64x32xf32, #tpu.memory_space<vmem>>, vector<64x32xf32>
    %cst_65 = arith.constant dense<0.000000e+00> : vector<8x32xf32>
    %134 = tpu.matmul %132, %133, %cst_65 {dimension_numbers = #tpu.dot_dimension_numbers<[1], [0], [0], [1], [0, 0, 1, 1], [], []>} : vector<8x64xf32>, vector<64x32xf32>, vector<8x32xf32> -> vector<8x32xf32>
    %c0_66 = arith.constant 0 : index
    %c0_67 = arith.constant 0 : index
    %135 = vector.load %arg16[%c0_66, %c0_67] : memref<1x32xf32, #tpu.memory_space<vmem>>, vector<1x32xf32>
    %136 = vector.broadcast %135 : vector<1x32xf32> to vector<8x32xf32>
    %137 = arith.addf %134, %136 : vector<8x32xf32>
    %138 = arith.addf %125, %137 : vector<8x32xf32>
    %cst_68 = arith.constant dense<0.000000e+00> : vector<8xf32>
    %139 = vector.multi_reduction <add>, %138, %cst_68 [1] : vector<8x32xf32> to vector<8xf32>
    %140 = vector.shape_cast %139 : vector<8xf32> to vector<8x1xf32>
    %cst_69 = arith.constant 3.200000e+01 : f32
    %141 = vector.broadcast %cst_69 : f32 to vector<8x1xf32>
    %142 = arith.divf %140, %141 : vector<8x1xf32>
    %143 = vector.broadcast %142 : vector<8x1xf32> to vector<8x32xf32>
    %144 = arith.subf %138, %143 : vector<8x32xf32>
    %145 = vector.broadcast %142 : vector<8x1xf32> to vector<8x32xf32>
    %146 = arith.subf %138, %145 : vector<8x32xf32>
    %147 = arith.mulf %144, %146 : vector<8x32xf32>
    %cst_70 = arith.constant dense<0.000000e+00> : vector<8xf32>
    %148 = vector.multi_reduction <add>, %147, %cst_70 [1] : vector<8x32xf32> to vector<8xf32>
    %149 = vector.shape_cast %148 : vector<8xf32> to vector<8x1xf32>
    %cst_71 = arith.constant 3.200000e+01 : f32
    %150 = vector.broadcast %cst_71 : f32 to vector<8x1xf32>
    %151 = arith.divf %149, %150 : vector<8x1xf32>
    %152 = vector.broadcast %142 : vector<8x1xf32> to vector<8x32xf32>
    %153 = arith.subf %138, %152 : vector<8x32xf32>
    %cst_72 = arith.constant 9.99999974E-6 : f32
    %154 = vector.broadcast %cst_72 : f32 to vector<8x1xf32>
    %155 = arith.addf %151, %154 : vector<8x1xf32>
    %156 = math.rsqrt %155 : vector<8x1xf32>
    %157 = vector.broadcast %156 : vector<8x1xf32> to vector<8x32xf32>
    %158 = arith.mulf %153, %157 : vector<8x32xf32>
    %c0_73 = arith.constant 0 : index
    %c0_74 = arith.constant 0 : index
    %159 = vector.load %arg21[%c0_73, %c0_74] : memref<1x32xf32, #tpu.memory_space<vmem>>, vector<1x32xf32>
    %160 = vector.broadcast %159 : vector<1x32xf32> to vector<8x32xf32>
    %161 = arith.mulf %158, %160 : vector<8x32xf32>
    %c0_75 = arith.constant 0 : index
    %c0_76 = arith.constant 0 : index
    %162 = vector.load %arg22[%c0_75, %c0_76] : memref<1x32xf32, #tpu.memory_space<vmem>>, vector<1x32xf32>
    %163 = vector.broadcast %162 : vector<1x32xf32> to vector<8x32xf32>
    %164 = arith.addf %161, %163 : vector<8x32xf32>
    %c0_77 = arith.constant 0 : index
    %c0_78 = arith.constant 0 : index
    %c0_79 = arith.constant 0 : index
    %165 = vector.load %arg23[%c0_77, %c0_78, %c0_79] : memref<1x8x32xf32, #tpu.memory_space<vmem>>, vector<1x8x32xf32>
    %166 = vector.shape_cast %165 : vector<1x8x32xf32> to vector<8x32xf32>
    %167 = vector.shape_cast %164 : vector<8x32xf32> to vector<1x8x32xf32>
    tpu.vector_store %arg23[%c0_77, %c0_78, %c0_79], %167 {strides = array<i32>} : memref<1x8x32xf32, #tpu.memory_space<vmem>>, vector<1x8x32xf32>,
    return
  }
  func.func @transform_0(%arg0: i32) -> (i32, i32, i32) {
    %c0_i32 = arith.constant 0 : i32
    %c0_i32_0 = arith.constant 0 : i32
    %c0_i32_1 = arith.constant 0 : i32
    return %arg0, %c0_i32, %c0_i32_0 : i32, i32, i32
  }
  func.func @transform_1(%arg0: i32) -> (i32, i32, i32) {
    %c0_i32 = arith.constant 0 : i32
    %c0_i32_0 = arith.constant 0 : i32
    %c0_i32_1 = arith.constant 0 : i32
    return %arg0, %c0_i32, %c0_i32_0 : i32, i32, i32
  }
  func.func @transform_2(%arg0: i32) -> (i32, i32) {
    %c0_i32 = arith.constant 0 : i32
    %c0_i32_0 = arith.constant 0 : i32
    %c0_i32_1 = arith.constant 0 : i32
    return %c0_i32, %c0_i32_0 : i32, i32
  }
  func.func @transform_3(%arg0: i32) -> (i32, i32) {
    %c0_i32 = arith.constant 0 : i32
    %c0_i32_0 = arith.constant 0 : i32
    %c0_i32_1 = arith.constant 0 : i32
    return %c0_i32, %c0_i32_0 : i32, i32
  }
  func.func @transform_4(%arg0: i32) -> (i32, i32) {
    %c0_i32 = arith.constant 0 : i32
    %c0_i32_0 = arith.constant 0 : i32
    %c0_i32_1 = arith.constant 0 : i32
    return %c0_i32, %c0_i32_0 : i32, i32
  }
  func.func @transform_5(%arg0: i32) -> (i32, i32) {
    %c0_i32 = arith.constant 0 : i32
    %c0_i32_0 = arith.constant 0 : i32
    %c0_i32_1 = arith.constant 0 : i32
    return %c0_i32, %c0_i32_0 : i32, i32
  }
  func.func @transform_6(%arg0: i32) -> (i32, i32) {
    %c0_i32 = arith.constant 0 : i32
    %c0_i32_0 = arith.constant 0 : i32
    %c0_i32_1 = arith.constant 0 : i32
    return %c0_i32, %c0_i32_0 : i32, i32
  }
  func.func @transform_7(%arg0: i32) -> (i32, i32) {
    %c0_i32 = arith.constant 0 : i32
    %c0_i32_0 = arith.constant 0 : i32
    %c0_i32_1 = arith.constant 0 : i32
    return %c0_i32, %c0_i32_0 : i32, i32
  }
  func.func @transform_8(%arg0: i32) -> (i32, i32) {
    %c0_i32 = arith.constant 0 : i32
    %c0_i32_0 = arith.constant 0 : i32
    %c0_i32_1 = arith.constant 0 : i32
    return %c0_i32, %c0_i32_0 : i32, i32
  }
  func.func @transform_9(%arg0: i32) -> (i32, i32) {
    %c0_i32 = arith.constant 0 : i32
    %c0_i32_0 = arith.constant 0 : i32
    %c0_i32_1 = arith.constant 0 : i32
    return %c0_i32, %c0_i32_0 : i32, i32
  }
  func.func @transform_10(%arg0: i32) -> (i32, i32) {
    %c0_i32 = arith.constant 0 : i32
    %c0_i32_0 = arith.constant 0 : i32
    %c0_i32_1 = arith.constant 0 : i32
    return %c0_i32, %c0_i32_0 : i32, i32
  }
  func.func @transform_11(%arg0: i32) -> (i32, i32) {
    %c0_i32 = arith.constant 0 : i32
    %c0_i32_0 = arith.constant 0 : i32
    %c0_i32_1 = arith.constant 0 : i32
    return %c0_i32, %c0_i32_0 : i32, i32
  }
  func.func @transform_12(%arg0: i32) -> (i32, i32) {
    %c0_i32 = arith.constant 0 : i32
    %c0_i32_0 = arith.constant 0 : i32
    %c0_i32_1 = arith.constant 0 : i32
    return %c0_i32, %c0_i32_0 : i32, i32
  }
  func.func @transform_13(%arg0: i32) -> (i32, i32) {
    %c0_i32 = arith.constant 0 : i32
    %c0_i32_0 = arith.constant 0 : i32
    %c0_i32_1 = arith.constant 0 : i32
    return %c0_i32, %c0_i32_0 : i32, i32
  }
  func.func @transform_14(%arg0: i32) -> (i32, i32) {
    %c0_i32 = arith.constant 0 : i32
    %c0_i32_0 = arith.constant 0 : i32
    %c0_i32_1 = arith.constant 0 : i32
    return %c0_i32, %c0_i32_0 : i32, i32
  }
  func.func @transform_15(%arg0: i32) -> (i32, i32) {
    %c0_i32 = arith.constant 0 : i32
    %c0_i32_0 = arith.constant 0 : i32
    %c0_i32_1 = arith.constant 0 : i32
    return %c0_i32, %c0_i32_0 : i32, i32
  }
  func.func @transform_16(%arg0: i32) -> (i32, i32) {
    %c0_i32 = arith.constant 0 : i32
    %c0_i32_0 = arith.constant 0 : i32
    %c0_i32_1 = arith.constant 0 : i32
    return %c0_i32, %c0_i32_0 : i32, i32
  }
  func.func @transform_17(%arg0: i32) -> (i32, i32) {
    %c0_i32 = arith.constant 0 : i32
    %c0_i32_0 = arith.constant 0 : i32
    %c0_i32_1 = arith.constant 0 : i32
    return %c0_i32, %c0_i32_0 : i32, i32
  }
  func.func @transform_18(%arg0: i32) -> (i32, i32) {
    %c0_i32 = arith.constant 0 : i32
    %c0_i32_0 = arith.constant 0 : i32
    %c0_i32_1 = arith.constant 0 : i32
    return %c0_i32, %c0_i32_0 : i32, i32
  }
  func.func @transform_19(%arg0: i32) -> (i32, i32) {
    %c0_i32 = arith.constant 0 : i32
    %c0_i32_0 = arith.constant 0 : i32
    %c0_i32_1 = arith.constant 0 : i32
    return %c0_i32, %c0_i32_0 : i32, i32
  }
  func.func @transform_20(%arg0: i32) -> (i32, i32) {
    %c0_i32 = arith.constant 0 : i32
    %c0_i32_0 = arith.constant 0 : i32
    %c0_i32_1 = arith.constant 0 : i32
    return %c0_i32, %c0_i32_0 : i32, i32
  }
  func.func @transform_21(%arg0: i32) -> (i32, i32) {
    %c0_i32 = arith.constant 0 : i32
    %c0_i32_0 = arith.constant 0 : i32
    %c0_i32_1 = arith.constant 0 : i32
    return %c0_i32, %c0_i32_0 : i32, i32
  }
  func.func @transform_22(%arg0: i32) -> (i32, i32, i32) {
    %c0_i32 = arith.constant 0 : i32
    %c0_i32_0 = arith.constant 0 : i32
    %c0_i32_1 = arith.constant 0 : i32
    return %arg0, %c0_i32, %c0_i32_0 : i32, i32, i32
  }
}

</mosaic_0001>

<bundles_post_ra>
// kernel: tpu_custom_call.1
= control target key start
LH: loop header
LB: loop body
LE: loop exit
PB: predicated region body
PF: predicated region fallthrough
CT: control target
= control target key end

     0   :  { %s5527_s0 = inlined_call_operand.hbm [shape: f32[2,8,32], index: 0, kind: input, shape index: {}]   ;;  %s5528_s1 = inlined_call_operand.vmem [shape: f32[2,16,32], index: 1, kind: input, shape index: {}]   ;;  %s5529_s2 = inlined_call_operand.vmem [shape: f32[32,96], index: 2, kind: input, shape index: {}]   ;;  %s5530_s3 = inlined_call_operand.vmem [shape: f32[1,96], index: 3, kind: input, shape index: {}]   ;;  %s5531_s4 = inlined_call_operand.vmem [shape: f32[32,32], index: 4, kind: input, shape index: {}]   ;;  %s5532_s5 = inlined_call_operand.vmem [shape: f32[1,32], index: 5, kind: input, shape index: {}]   ;;  %s5533_s6 = inlined_call_operand.hbm [shape: f32[32,32], index: 6, kind: input, shape index: {}]   ;;  %s5534_s7 = inlined_call_operand.vmem [shape: f32[1,32], index: 7, kind: input, shape index: {}]   ;;  %s5535_s8 = inlined_call_operand.hbm [shape: f32[32,64], index: 8, kind: input, shape index: {}]   ;;  %s5536_s9 = inlined_call_operand.vmem [shape: f32[1,64], index: 9, kind: input, shape index: {}]   ;;  %s5537_s10 = inlined_call_operand.hbm [shape: f32[32,32], index: 10, kind: input, shape index: {}]   ;;  %s5538_s11 = inlined_call_operand.vmem [shape: f32[1,32], index: 11, kind: input, shape index: {}]   ;;  %s5539_s12 = inlined_call_operand.hbm [shape: f32[32,64], index: 12, kind: input, shape index: {}]   ;;  %s5540_s13 = inlined_call_operand.vmem [shape: f32[1,64], index: 13, kind: input, shape index: {}]   ;;  %s5541_s14 = inlined_call_operand.vmem [shape: f32[64,32], index: 14, kind: input, shape index: {}]   ;;  %s5542_s15 = inlined_call_operand.vmem [shape: f32[1,32], index: 15, kind: input, shape index: {}]   ;;  %s5543_s16 = inlined_call_operand.vmem [shape: f32[1,32], index: 16, kind: input, shape index: {}]   ;;  %s5544_s17 = inlined_call_operand.vmem [shape: f32[1,32], index: 17, kind: input, shape index: {}]   ;;  %s5545_s18 = inlined_call_operand.vmem [shape: f32[1,32], index: 18, kind: input, shape index: {}]   ;;  %s5546_s19 = inlined_call_operand.vmem [shape: f32[1,32], index: 19, kind: input, shape index: {}]   ;;  %s5547_s20 = inlined_call_operand.vmem [shape: f32[1,32], index: 20, kind: input, shape index: {}]   ;;  %s5548_s21 = inlined_call_operand.vmem [shape: f32[1,32], index: 21, kind: input, shape index: {}]   ;;  %s5549_s22 = inlined_call_operand.hbm [shape: f32[2,8,32], index: 22, kind: output, shape index: {}]  }
   0x1   :  { %5567 = sst [smem:[#allocation16_spill]] %s5527_s0 }
   0x2   :  { %5568 = sst [smem:[#allocation17_spill]] %s5528_s1 }
   0x3   :  { %5569 = sst [smem:[#allocation18_spill]] %s5529_s2 }
   0x4   :  { %5570 = sst [smem:[#allocation19_spill]] %s5530_s3 }
   0x5   :  { %5571 = sst [smem:[#allocation20_spill]] %s5531_s4 }
   0x6   :  { %5572 = sst [smem:[#allocation21_spill]] %s5532_s5 }
   0x7   :  { %5573 = sst [smem:[#allocation22_spill]] %s5533_s6 }
   0x8   :  { %5574 = sst [smem:[#allocation23_spill]] %s5534_s7 }
   0x9   :  { %5575 = sst [smem:[#allocation24_spill]] %s5535_s8 }
   0xa   :  { %5576 = sst [smem:[#allocation25_spill]] %s5536_s9 }
   0xb   :  { %5577 = sst [smem:[#allocation26_spill]] %s5537_s10 }
   0xc   :  { %5578 = sst [smem:[#allocation27_spill]] %s5540_s13 }
   0xd   :  { %5579 = sst [smem:[#allocation28_spill]] %s5541_s14 }
   0xe   :  { %5580 = sst [smem:[#allocation29_spill]] %s5542_s15 }
   0xf   :  { %5581 = sst [smem:[#allocation30_spill]] %s5545_s18 }
  0x10   :  { %5582 = sst [smem:[#allocation31_spill]] %s5546_s19 }
  0x11   :  { %5583 = sst [smem:[#allocation32_spill]] %s5547_s20 }
  0x12   :  { %5584 = sst [smem:[#allocation33_spill]] %s5548_s21 }
  0x13   :  { %5585 = sst [smem:[#allocation34_spill]] %s5549_s22 }
  0x14   :  { %27 = vsyncpa [#allocation3], 0 }
  0x15   :  { %29 = vsyncpa [#allocation3 + $0x1], 0 }
  0x16   :  { %30 = vsyncpa [#allocation6], 0 }
  0x17   :  { %31 = vsyncpa [#allocation9], 0 }
  0x18   :  { %32 = vsyncpa [#allocation4], 0 }
  0x19   :  { %34 = vsyncpa [#allocation4 + $0x1], 0  ;;  %s4897_s3 = smov 0   ;;  %s4899_s28 = smov 0  }
  0x1a   :  { %s4901_s29 = smov 0   ;;  %s4903_s30 = smov 0  }
  0x1b LB: > { %s4761_s4 = smov [#allocation5]   ;;  %s4918_s23 = sadd.s32 4294967295, %s4759_s30   ;;  %s4759_s30 = sphi %s4903_s30, %s5630_s30   ;;  %s4755_s29 = sphi %s4901_s29, %s5629_s29   ;;  %s4751_s28 = sphi %s4899_s28, %s5628_s28   ;;  %s4747_s3 = sphi %s4897_s3, %s5627_s3  }
  0x1c   : > { %s567_s0 = sshll.u32 %s4761_s4, 4  ;;  %p4045_p0 = scmp.ge.s32.totalorder %s4759_s30, 1  ;;  %s4923_s0 = int_to_ptr.vmem [resolvable:$true] %s567_s0 }
  0x1d   : > { %p5556_p1 = scmp.eq.s32.totalorder %s4918_s23, 0  ;;  %p543_p2 = scmp.lt.s32.totalorder %s4759_s30, 3 }
  0x1e   : > { %s4762_s5 = smov [#allocation8]   ;;  %s4763_s25 = smov [#allocation7]  }
  0x1f   : > { %p4925_p3 = pnand %p4045_p0, %p543_p2  ;;  %s599_s24 = sshll.u32 %s4762_s5, 4  ;;  %s4938_s24 = int_to_ptr.vmem [resolvable:$true] %s599_s24 }
  0x20   : > { %s583_s26 = sshll.u32 %s4763_s25, 4  ;;  %s5588_s4 = sld [smem:[#allocation22_spill]]  ;;  %s4940_s26 = int_to_ptr.vmem [resolvable:$true] %s583_s26 }
  0x21   : > { %s5586_s1 = scalar_select %p4925_p3, 1, 0 }
  0x22   : > { %p4423_p5 = pneg %p4925_p3 }
  0x24   : > { %p4934_p6 = pnand %p4423_p5, %p5556_p1 }
  0x26   : > { %s4543_s22 = scalar_lea.hbm %s5588_s4, 512  ;;  %p4950_p8 = pneg %p4934_p6 }
  0x27   : > { %p4544_p7 = scmp.ne.s32.totalorder %s5588_s4, %s4543_s22  ;;  %p4550_p11 = scmp.lt.u32.totalorder %s4543_s22, %s5588_s4 }
  0x29   : > { %p4546_p9 = pnand %p4950_p8, %p4544_p7 }
  0x2b   : > { %p4547_p10 = pneg %p4546_p9 }
  0x2d   : > { %p4552_p12 = pnand %p4550_p11, %p4547_p10 }
  0x2f   : > { %4555 = shalt.err (!%p4552_p12)
}
  0x30   : > { %s4556_s20 = scalar_lea.vmem %s4923_s0, 512  ;;  %p4564_p5 = scmp.lt.s32.totalorder %s4923_s0, %s4923_s0 }
  0x31   : > { %p4557_p13 = scmp.ne.s32.totalorder %s4923_s0, %s4556_s20  ;;  %p4565_p4 = scmp.lt.s32.totalorder %s4556_s20, %s4556_s20 }
  0x33   : > { %p4559_p0 = pnand %p4557_p13, %p4950_p8  ;;  %p4566_p7 = por %p4565_p4, %p4564_p5 }
  0x35   : > { %p4560_p2 = pneg %p4559_p0 }
  0x37   : > { %p4567_p9 = pnand %p4566_p7, %p4560_p2 }
  0x39   : > { %4570 = shalt.err (!%p4567_p9)
}
  0x3a   : > { %s4764_s21 = smov 128   ;;  %s4765_s15 = smov 8  }
  0x3b   : > { %4426 = dma.hbm_to_vmem [thread:$0]  (!%p4934_p6), %s5588_s4, 512, %s4923_s0, [#allocation6], %s4764_s21, %s4764_s21, %s4765_s15  }
  0x3c   : > { %s5590_s10 = sld [smem:[#allocation26_spill]] }
  0x42   : > { %s4571_s20 = scalar_lea.hbm %s5590_s10, 512 }
  0x43   : > { %p4572_p4 = scmp.ne.s32.totalorder %s5590_s10, %s4571_s20  ;;  %p4578_p12 = scmp.lt.u32.totalorder %s4571_s20, %s5590_s10 }
  0x45   : > { %p4574_p10 = pnand %p4572_p4, %p4950_p8 }
  0x47   : > { %p4575_p11 = pneg %p4574_p10 }
  0x49   : > { %p4580_p13 = pnand %p4578_p12, %p4575_p11 }
  0x4b   : > { %4583 = shalt.err (!%p4580_p13)
}
  0x4c   : > { %s4584_s0 = scalar_lea.vmem %s4938_s24, 512  ;;  %p4592_p7 = scmp.lt.s32.totalorder %s4938_s24, %s4938_s24 }
  0x4d   : > { %p4585_p0 = scmp.ne.s32.totalorder %s4938_s24, %s4584_s0  ;;  %p4593_p9 = scmp.lt.s32.totalorder %s4584_s0, %s4584_s0 }
  0x4f   : > { %p4587_p2 = pnand %p4585_p0, %p4950_p8  ;;  %p4594_p4 = por %p4593_p9, %p4592_p7 }
  0x51   : > { %p4588_p5 = pneg %p4587_p2 }
  0x53   : > { %p4595_p10 = pnand %p4594_p4, %p4588_p5 }
  0x55   : > { %4598 = shalt.err (!%p4595_p10)
}
  0x56   : > { %4432 = dma.hbm_to_vmem [thread:$0]  (!%p4934_p6), %s5590_s10, 512, %s4938_s24, [#allocation9], %s4764_s21, %s4764_s21, %s4765_s15  }
  0x57   : > { %s5591_s8 = sld [smem:[#allocation24_spill]] }
  0x5d   : > { %s4599_s22 = scalar_lea.hbm %s5591_s8, 512 }
  0x5e   : > { %p4600_p11 = scmp.ne.s32.totalorder %s5591_s8, %s4599_s22  ;;  %p4606_p0 = scmp.lt.u32.totalorder %s4599_s22, %s5591_s8 }
  0x60   : > { %p4602_p12 = pnand %p4600_p11, %p4950_p8 }
  0x62   : > { %p4603_p13 = pneg %p4602_p12 }
  0x64   : > { %p4608_p2 = pnand %p4606_p0, %p4603_p13 }
  0x66   : > { %4611 = shalt.err (!%p4608_p2)
}
  0x67   : > { %s4612_s24 = scalar_lea.vmem %s4940_s26, 512  ;;  %p4620_p4 = scmp.lt.s32.totalorder %s4940_s26, %s4940_s26 }
  0x68   : > { %p4613_p5 = scmp.ne.s32.totalorder %s4940_s26, %s4612_s24  ;;  %p4621_p10 = scmp.lt.s32.totalorder %s4612_s24, %s4612_s24 }
  0x6a   : > { %p4615_p7 = pnand %p4613_p5, %p4950_p8  ;;  %p4622_p11 = por %p4621_p10, %p4620_p4 }
  0x6c   : > { %p4616_p9 = pneg %p4615_p7 }
  0x6e   : > { %p4623_p12 = pnand %p4622_p11, %p4616_p9 }
  0x70   : > { %4626 = shalt.err (!%p4623_p12)
}
  0x71   : > { %4429 = dma.hbm_to_vmem [thread:$0]  (!%p4934_p6), %s5591_s8, 512, %s4940_s26, [#allocation6], %s4764_s21, %s4764_s21, %s4765_s15  }
  0x72   : > { %s4766_s14 = smov [#allocation10]   ;;  %s4627_s2 = scalar_lea.hbm %s5539_s12, 512 }
  0x73   : > { %s615_s18 = sshll.u32 %s4766_s14, 4  ;;  %p4628_p13 = scmp.ne.s32.totalorder %s5539_s12, %s4627_s2  ;;  %s616_s18 = int_to_ptr.vmem [resolvable:$true] %s615_s18 }
  0x74   : > { %p4634_p5 = scmp.lt.u32.totalorder %s4627_s2, %s5539_s12 }
  0x75   : > { %p4630_p0 = pnand %p4628_p13, %p4950_p8 }
  0x77   : > { %p4631_p2 = pneg %p4630_p0 }
  0x79   : > { %p4636_p7 = pnand %p4634_p5, %p4631_p2 }
  0x7b   : > { %4639 = shalt.err (!%p4636_p7)
}
  0x7c   : > { %s4640_s26 = scalar_lea.vmem %s616_s18, 512  ;;  %p4648_p11 = scmp.lt.s32.totalorder %s616_s18, %s616_s18 }
  0x7d   : > { %p4641_p9 = scmp.ne.s32.totalorder %s616_s18, %s4640_s26  ;;  %p4649_p12 = scmp.lt.s32.totalorder %s4640_s26, %s4640_s26 }
  0x7f   : > { %p4643_p4 = pnand %p4641_p9, %p4950_p8  ;;  %p4650_p1 = por %p4649_p12, %p4648_p11 }
  0x81   : > { %p4644_p10 = pneg %p4643_p4 }
  0x83   : > { %p4651_p3 = pnand %p4650_p1, %p4644_p10 }
  0x85   : > { %4654 = shalt.err (!%p4651_p3)
}
  0x86   : > { %4435 = dma.hbm_to_vmem [thread:$0]  (!%p4934_p6), %s5539_s12, 512, %s616_s18, [#allocation9], %s4764_s21, %s4764_s21, %s4765_s15  }
  0x87   : > { %s4044_s6 = sadd.s32 4294967294, %s4759_s30   ;;  %s5049_s5 = sadd.s32 1, %s4759_s30  }
  0x88   : > { %s44_s14 = ssub.s32 %s4759_s30, %s5049_s5  ;;  %s47_s19 = sadd.s32 1, %s4755_s29 }
  0x89   : > { %p45_p1 = scmp.eq.s32.totalorder %s44_s14, 0  ;;  %p54_p3 = scmp.ne.s32.totalorder %s4755_s29, %s4751_s28 }
  0x8a   : > { %p55_p8 = scmp.eq.s32.totalorder %s4759_s30, 0  ;;  %p60_p13 = scmp.ne.s32.totalorder %s4751_s28, %s4747_s3 }
  0x8b   : > { %s5060_s22 = scalar_select %p45_p1, %s4755_s29, %s47_s19  }
  0x8c   : > { %p5062_p0 = por %p55_p8, %p54_p3  ;;  %p5593_p2 = scmp.eq.s32.totalorder %s4918_s23, 0 }
  0x8d   : > { %p530_p5 = scmp.eq.s32.totalorder %s4918_s23, 1  ;;  %p536_p7 = scmp.eq.s32.totalorder %s4044_s6, 1 }
  0x8e   : > { %p5068_p6 = por %p5593_p2, %p60_p13  ;;  %p4448_p9 = scmp.lt.s32.totalorder %s4759_s30, 2 }
  0x8f   : > { %s656_s15 = sand.u32 1, %s4755_s29   ;;  %p5075_p4 = por %p530_p5, %p54_p3 }
  0x90   : > { %p5079_p10 = por %p536_p7, %p60_p13  ;;  %s4051_s25 = sshll.u32 %s656_s15, 3 }
  0x91   : > { %s5595_s18 = scalar_select %p5075_p4, 1, 0 }
  0x92   : > { %s5596_s27 = scalar_select %p5079_p10, 1, 0 }
  0x93   : > { %s4052_s20 = sshll.u32 %s4759_s30, 7  ;;  %s5597_s0 = sld [smem:[#allocation16_spill]] }
  0x94   : > { %s660_s6 = scalar_lea.vmem [#allocation2], %s4051_s25  ;;  %p5093_p11 = pnand %p4448_p9, %p5062_p0 }
  0x95   : > { %s667_s14 = sshll.u32 %s660_s6, 4  ;;  %s657_s4 = scalar_lea.sflag [#allocation3], %s656_s15  ;;  %s5089_s14 = int_to_ptr.vmem [resolvable:$true] %s667_s14 }
  0x96   : > { %p4657_p1 = pneg %p5093_p11 }
  0x99   : > { %s5087_s13 = scalar_lea.hbm %s5597_s0, %s4052_s20  ;;  %s4660_s24 = scalar_lea.hbm %s5597_s0, 256 }
  0x9a   : > { %s4655_s8 = scalar_lea.hbm %s5087_s13, 128  ;;  %p4661_p13 = scmp.lt.u32.totalorder %s5087_s13, %s5597_s0 }
  0x9b   : > { %p4656_p12 = scmp.ne.s32.totalorder %s5087_s13, %s4655_s8  ;;  %p4662_p0 = scmp.lt.u32.totalorder %s4660_s24, %s4655_s8 }
  0x9c   : > { %p4664_p5 = scmp.lt.u32.totalorder %s4655_s8, %s5087_s13 }
  0x9d   : > { %p4658_p3 = pnand %p4657_p1, %p4656_p12  ;;  %p4663_p2 = por %p4662_p0, %p4661_p13 }
  0x9f   : > { %p4659_p8 = pneg %p4658_p3  ;;  %p4665_p7 = por %p4664_p5, %p4663_p2 }
  0xa1   : > { %p4666_p9 = pnand %p4665_p7, %p4659_p8 }
  0xa3   : > { %4669 = shalt.err (!%p4666_p9)
}
  0xa4   : > { %s4670_s15 = scalar_lea.vmem %s5089_s14, 128  ;;  %s4767_s6 = smov [#allocation2]  }
  0xa5   : > { %p4671_p12 = scmp.ne.s32.totalorder %s5089_s14, %s4670_s15  ;;  %s4675_s25 = sshll.u32 %s4767_s6, 4  ;;  %s4676_s25 = int_to_ptr.vmem [resolvable:$false] %s4675_s25 }
  0xa6   : > { %s4677_s20 = scalar_lea.vmem %s4676_s25, 256  ;;  %p4678_p4 = scmp.lt.s32.totalorder %s5089_s14, %s4676_s25 }
  0xa7   : > { %p4673_p3 = pnand %p4671_p12, %p4657_p1  ;;  %p4679_p13 = scmp.lt.s32.totalorder %s4677_s20, %s4670_s15 }
  0xa9   : > { %p4674_p10 = pneg %p4673_p3  ;;  %p4680_p0 = por %p4679_p13, %p4678_p4 }
  0xab   : > { %p4681_p2 = pnand %p4680_p0, %p4674_p10 }
  0xad   : > { %4684 = shalt.err (!%p4681_p2)
}
  0xae   : > { %4439 = dma.hbm_to_vmem [thread:$0]  (!%p5093_p11), %s5087_s13, 128, %s5089_s14, %s657_s4  }
  0xaf   : > { %p5599_p8 = scmp.ne.s32.totalorder %s5586_s1, 0 }
  0xb0   : > { %s5125_s8 = sand.u32 (!%p5599_p8), 1, %s4751_s28  }
  0xb1   : > { %684 = sbr.rel (%p5599_p8) target bundleno = 5138 (0x1412), region = 108  ;;  %s5560_s24 = sshll.u32 (!%p5599_p8), %s5125_s8, 3 }
  0xb2   : > { %s687_s2 = scalar_lea.sflag (!%p5599_p8), [#allocation3], %s5125_s8  ;;  %s690_s26 = scalar_lea.vmem (!%p5599_p8), [#allocation2], %s5560_s24 }
  0xb8   : > { %4730 = dma.done.wait (%p5068_p6), %s687_s2, 128  }
  0xb9   : > { %4732 = vsyncadd (%p5068_p6), %s687_s2, 4294967168  ;;  %p5600_p4 = scmp.eq.s32.totalorder %s4918_s23, 0 }
  0xbb   : > { %4734 = dma.done.wait (%p5600_p4), [#allocation6], 1024   ;;  %p5601_p10 = pmov %p5600_p4 }
  0xbc   : > { %p5602_p11 = pmov %p5600_p4 }
  0xbd   : > { %4736 = vsyncadd (%p5601_p10), [#allocation6], 4294966272 }
  0xbe   : > { %4738 = dma.done.wait (%p5602_p11), [#allocation9], 1024   ;;  %p5603_p1 = pmov %p5600_p4 }
  0xbf   : > { %v4768_v0 = vmov 0.0|0.0   ;;  %vm4769_vm0 = vmmov 0   ;;  %v4770_v1 = vmov 0.0   ;;  %s5604_s21 = sld [smem:[#allocation18_spill]]  ;;  %v5162_v8 = vld [vmem:[%s690_s26] sm:$0xff]  ;;  %vm791_vm1 = vcmask 261120  }
  0xc0   : > { %4740 = vsyncadd (%p5603_p1), [#allocation9], 4294966272  ;;  %4353 = vmatprep.subr.bf16.mxu0 %v4768_v0  ;;  %4196 = vmatprep.mubr.msk.f32.mxu0 %vm4769_vm0, %v4770_v1  ;;  %s5605_s1 = sld [smem:[#allocation19_spill]]  ;;  %s4771_s4 = smov 104   ;;  %vm1012_vm2 = vcmask 64512   ;;  %vm2070_vm3 = vcmask 130048  }
  0xc1   : > { %4199 = vmatprep.subr.mxu1 %v4770_v1  ;;  %4201 = vmatprep.mubr.msk.f32.mxu1 %vm4769_vm0, %v4770_v1  ;;  %s4772_s26 = smov 120   ;;  %s5564_s13 = smov 96   ;;  %vm2072_vm4 = vcmask 195584   ;;  %vm3805_vm5 = vcmask 523264  }
  0xc2   : > { %s4774_s14 = smov 112   ;;  %s4775_s19 = smov 64  }
  0xc3   : > { %s5606_s25 = sld [smem:[#allocation20_spill]]  ;;  %s5563_s20 = smov 16  }
  0xc4   : > { %s5562_s2 = smov 8   ;;  %p772_p6 = scmp.lt.s32.totalorder %s4918_s23, 1 }
  0xc5   : > { %v780_v2 = vld [vmem:[%s5604_s21] sm:$0xff]  ;;  %v781_v3 = vld [vmem:[%s5604_s21 + $0x8] sm:$0xff]  ;;  %v782_v4 = vld [vmem:[%s5604_s21 + $0x10] sm:$0xff]  ;;  %s5609_s9 = sld [smem:[#allocation25_spill]]  ;;  %s5610_s7 = sld [smem:[#allocation23_spill]] }
  0xc6   : > { %v4354_v5 = vpack.c.bf16 %v781_v3, %v780_v2  ;;  %v783_v6 = vld [vmem:[%s5604_s21 + $0x18] sm:$0xff]  ;;  %v4062_v9 = vld [vmem:[%s5605_s1] ss:$0 sm:$0xff]  ;;  %s5561_s1 = smov 24   ;;  %s5614_s24 = smov 24  }
  0xc7   : > { %v4357_v7 = vpack.c.bf16 %v783_v6, %v782_v4  ;;  %p5624_p7 = scmp.ne.s32.totalorder %s5595_s18, 0 }
  0xc8   : > { %4355 = vmatpush3.bf16.msra.mxu0 %v4354_v5 }
  0xc9   : > { %4356 = vmatprep.subr.bf16.mxu0 %v4768_v0 }
  0xcc   : > { %4358 = vmatpush3.bf16.msra.mxu0 %v4357_v7 }
  0xcd   : > { %4214 = vmatprep.subr.mxu0 %v4770_v1 }
  0xcf   : > { %4197 = vmatmul.mubr.msk.f32.vlgmr.msra.gmra.mrb[0].mxu0 %vm791_vm1, %v5162_v8 }
  0xd0   : > { %4216 = vmatprep.mubr.msk.f32.mxu0 %vm4769_vm0, %v4770_v1 }
 0x1a2   : > { %v861_v10 = vpop.f32.mrb[0].mxu0 }
 0x1a3   : > { %v5172_v11 = vadd.f32 %v4062_v9, %v861_v10  ;;  %v4198_v12 = vpop.f32.mrb[1].mxu0 }
 0x1a5   : > { %870 = vrot.lane.b32.xlu1 %v5172_v11, %s4771_s4  ;;  %866 = vrot.lane.b32.xlu0 %v5172_v11, %s4772_s26 }
 0x1a9   : > { %872 = vrot.lane.b32.xlu1 %v5172_v11, %s5564_s13  ;;  %868 = vrot.lane.b32.xlu0 %v5172_v11, %s4774_s14 }
 0x217   : > { %v867_v13 = vpop.permute.xlu0 %866  ;;  %v871_v14 = vpop.permute.xlu1 %870 }
 0x218   : > { %874 = vrot.lane.b32.xlu0 %v867_v13, %s5564_s13 }
 0x21b   : > { %v869_v15 = vpop.permute.xlu0 %868  ;;  %v873_v16 = vpop.permute.xlu1 %872 }
 0x21c   : > { %878 = vrot.lane.b32.xlu0 %v871_v14, %s5564_s13  ;;  %876 = vrot.lane.b32.xlu1 %v869_v15, %s5564_s13  ;;  %s3911_s13 = scalar_lea.sflag [#allocation4], %s5125_s8 }
 0x245   : > { %884 = vxpose.xlu1.b32.start.end [1/1] (short) (narrow) %v873_v16, 8 }
 0x28a   : > { %v875_v17 = vpop.permute.xlu0 %874 }
 0x28b   : > { %916 = vxpose.xlu0.b32.start.end [1/1] (short) (narrow) %v875_v17, 8 }
 0x28e   : > { %v877_v18 = vpop.permute.xlu1 %876  ;;  %v879_v19 = vpop.permute.xlu0 %878 }
 0x28f   : > { %948 = vxpose.xlu0.b32.start.end [1/1] (short) (narrow) %v877_v18, 8 }
 0x293   : > { %980 = vxpose.xlu0.b32.start.end [1/1] (short) (narrow) %v879_v19, 8 }
 0x2c5   : > { %v900_v20 = vpop.trf.xlu1 }
 0x2c6   : > { %4200 = vmatpush3.msra.mxu1 %v900_v20 }
 0x2c7   : > { %4202 = vmatmul.mubr.msk.f32.vlgmr.msra.gmra.mrb[0].mxu1 %vm1012_vm2, %v5172_v11  ;;  %4204 = vmatprep.subr.mxu1 %v4770_v1 }
 0x2c8   : > { %4206 = vmatprep.mubr.msk.f32.mxu1 %vm4769_vm0, %v4770_v1 }
 0x30b   : > { %v932_v21 = vpop.trf.xlu0 }
 0x30c   : > { %4205 = vmatpush3.msra.mxu1 %v932_v21 }
 0x30d   : > { %4207 = vmatmul.mubr.msk.f32.vlgmr.msra.gmra.mrb[2].mxu1 %vm1012_vm2, %v867_v13  ;;  %4209 = vmatprep.subr.mxu1 %v4770_v1 }
 0x30e   : > { %4211 = vmatprep.mubr.msk.f32.mxu1 %vm4769_vm0, %v4770_v1 }
 0x30f   : > { %v964_v22 = vpop.trf.xlu0 }
 0x310   : > { %4210 = vmatpush3.msra.mxu1 %v964_v22 }
 0x311   : > { %4212 = vmatmul.mubr.msk.f32.vlgmr.msra.gmra.mrb[4].mxu1 %vm1012_vm2, %v869_v15  ;;  %4219 = vmatprep.subr.mxu1 %v4770_v1 }
 0x312   : > { %4221 = vmatprep.mubr.msk.f32.mxu1 %vm4769_vm0, %v4770_v1 }
 0x313   : > { %v996_v23 = vpop.trf.xlu0 }
 0x314   : > { %4215 = vmatpush3.msra.mxu0 %v996_v23 }
 0x315   : > { %4217 = vmatmul.mubr.msk.f32.vlgmr.msra.gmra.mrb[2].mxu0 %vm1012_vm2, %v871_v14  ;;  %4224 = vmatprep.subr.mxu0 %v4770_v1 }
 0x316   : > { %4226 = vmatprep.mubr.msk.f32.mxu0 %vm4769_vm0, %v4770_v1 }
 0x39a   : > { %v1081_v24 = vpop.f32.mrb[0].mxu1 }
 0x39b   : > { %v1301_v25 = vmul.f32 0.35355338, %v1081_v24  ;;  %v4203_v26 = vpop.f32.mrb[1].mxu1 }
 0x39d   : > { %v1305_v27 = vsel %vm1012_vm2, %v1301_v25, -inf }
 0x39e   : > { %1306 = vmax.xlane.f32.xlu1 %v1305_v27  ;;  %v2074_v27 = vld [vmem:[%s5606_s25] sm:$0xff] }
 0x3e0   : > { %v1153_v28 = vpop.f32.mrb[2].mxu1 }
 0x3e1   : > { %v1302_v29 = vmul.f32 0.35355338, %v1153_v28  ;;  %v4208_v30 = vpop.f32.mrb[3].mxu1  ;;  %v2075_v28 = vld [vmem:[%s5606_s25 + $0x8] sm:$0xff] }
 0x3e3   : > { %v1308_v31 = vsel %vm1012_vm2, %v1302_v29, -inf }
 0x3e4   : > { %1309 = vmax.xlane.f32.xlu0 %v1308_v31  ;;  %v1225_v32 = vpop.f32.mrb[4].mxu1  ;;  %v4776_v31 = vmov 1983009808  }
 0x3e5   : > { %v1303_v33 = vmul.f32 0.35355338, %v1225_v32  ;;  %v4213_v34 = vpop.f32.mrb[5].mxu1  ;;  %v1924_v32 = vunpack.c.l.s4 %v4776_v31 }
 0x3e6   : > { %v4777_v34 = vmov 1934713408  }
 0x3e7   : > { %v1311_v35 = vsel %vm1012_vm2, %v1303_v33, -inf }
 0x3e8   : > { %1312 = vmax.xlane.f32.xlu1 %v1311_v35  ;;  %v1297_v36 = vpop.f32.mrb[2].mxu0  ;;  %v1956_v35 = vunpack.c.l.s4 %v4777_v34 }
 0x3e9   : > { %v1304_v37 = vmul.f32 0.35355338, %v1297_v36  ;;  %v4218_v38 = vpop.f32.mrb[3].mxu0  ;;  %v1925_v36 = vunpack.c.0.s8 %v1924_v32  ;;  %v2276_v32 = vld [vmem:[#allocation7 + $0x18] sm:$0xff] }
 0x3eb   : > { %v1314_v39 = vsel %vm1012_vm2, %v1304_v37, -inf }
 0x3ec   : > { %1315 = vmax.xlane.f32.xlu1 %v1314_v39 }
 0x3fa   : > { %1349 = vrot.lane.b32.xlu0 %v5172_v11, %s4775_s19 }
 0x3fd   : > { %1351 = vrot.lane.b32.xlu1 %v867_v13, %s4775_s19 }
 0x3fe   : > { %1355 = vrot.lane.b32.xlu0 %v871_v14, %s4775_s19 }
 0x401   : > { %1353 = vrot.lane.b32.xlu1 %v869_v15, %s4775_s19  ;;  %s773_s19 = scalar_select %p772_p6, %s4918_s23, 1 }
 0x403   : > { %s4115_s15 = sshll.u32 %s773_s19, 4  ;;  %s5608_s19 = sld [smem:[#allocation21_spill]] }
 0x42b   : > { %v1307_v40 = vpop.xlane.xlu1 %1306 }
 0x42c   : > { %v1317_v41 = vsub.f32 %v1301_v25, %v1307_v40  ;;  %v1957_v40 = vunpack.c.0.s8 %v1956_v35 }
 0x42e   : > { %v1321_v42 = vmul.f32 1.442695, %v1317_v41 }
 0x430   : > { %4505 = vpow2.f32 %v1321_v42 }
 0x43a   : > { %v4506_v43 = vpop.eup %4505 }
 0x43b   : > { %v1329_v44 = vsel %vm1012_vm2, %v4506_v43, 0.0 }
 0x43c   : > { %1330 = vadd.xlane.f32.xlu1 %v1329_v44 }
 0x471   : > { %v1310_v45 = vpop.xlane.xlu0 %1309 }
 0x472   : > { %v1318_v46 = vsub.f32 %v1302_v29, %v1310_v45  ;;  %v4360_v29 = vpack.c.bf16 %v2075_v28, %v2074_v27  ;;  %v2273_v28 = vld [vmem:[#allocation7] sm:$0xff] }
 0x474   : > { %v1323_v47 = vmul.f32 1.442695, %v1318_v46 }
 0x475   : > { %v1313_v48 = vpop.xlane.xlu1 %1312  ;;  %v1350_v61 = vpop.permute.xlu0 %1349 }
 0x476   : > { %4507 = vpow2.f32 %v1323_v47  ;;  %v1319_v49 = vsub.f32 %v1303_v33, %v1313_v48  ;;  %v1926_v33 = vlaneseq }
 0x478   : > { %v1325_v50 = vmul.f32 1.442695, %v1319_v49 }
 0x479   : > { %v1316_v51 = vpop.xlane.xlu1 %1315  ;;  %v1356_v63 = vpop.permute.xlu0 %1355 }
 0x47a   : > { %4509 = vpow2.f32 %v1325_v50  ;;  %v1320_v52 = vsub.f32 %v1304_v37, %v1316_v51  ;;  %v1927_v37 = vshrl.u32 %v1926_v33, 7 }
 0x47c   : > { %v1327_v53 = vmul.f32 1.442695, %v1320_v52  ;;  %v5235_v41 = vsub.s32 %v1925_v36, %v1927_v37  ;;  %v5237_v47 = vsub.s32 %v1957_v40, %v1927_v37  ;;  %v4078_v36 = vld [vmem:[%s5608_s19] ss:$0 sm:$0xff]  ;;  %s5621_s19 = sld [smem:[#allocation33_spill]] }
 0x47d   : > { %v1352_v60 = vpop.permute.xlu1 %1351 }
 0x47e   : > { %4511 = vpow2.f32 %v1327_v53 }
 0x480   : > { %v4508_v54 = vpop.eup %4507 }
 0x481   : > { %v1332_v55 = vsel %vm1012_vm2, %v4508_v54, 0.0  ;;  %v1354_v62 = vpop.permute.xlu1 %1353 }
 0x482   : > { %1333 = vadd.xlane.f32.xlu0 %v1332_v55 }
 0x484   : > { %v4510_v56 = vpop.eup %4509 }
 0x485   : > { %v1335_v57 = vsel %vm1012_vm2, %v4510_v56, 0.0 }
 0x486   : > { %1336 = vadd.xlane.f32.xlu0 %v1335_v57  ;;  %v2077_v57 = vld [vmem:[%s5606_s25 + $0x18] sm:$0xff] }
 0x488   : > { %v4512_v58 = vpop.eup %4511 }
 0x489   : > { %v1338_v59 = vsel %vm1012_vm2, %v4512_v58, 0.0 }
 0x48a   : > { %1339 = vadd.xlane.f32.xlu1 %v1338_v59 }
 0x4b3   : > { %1361 = vxpose.xlu0.b32.start.end [1/1] (short) (narrow) %v1350_v61, 8 }
 0x4b7   : > { %1425 = vxpose.xlu0.b32.start.end [1/1] (short) (narrow) %v1354_v62, 8 }
 0x4bb   : > { %1457 = vxpose.xlu0.b32.start.end [1/1] (short) (narrow) %v1356_v63, 8 }
 0x4bd   : > { %1393 = vxpose.xlu1.b32.start.end [1/1] (short) (narrow) %v1352_v60, 8 }
 0x4c9   : > { %v1331_v2 = vpop.xlane.xlu1 %1330 }
 0x4ca   : > { %4513 = vrcp.f32 %v1331_v2 }
 0x4d4   : > { %v4514_v3 = vpop.eup %4513 }
 0x4d5   : > { %v1345_v4 = vmul.f32 %v4514_v3, %v4506_v43 }
 0x4d7   : > { %4220 = vmatpush3.xpose.msk.msra.mxu1 %vm1012_vm2, %v1345_v4 }
 0x4d8   : > { %4229 = vmatprep.subr.mxu1 %v4770_v1 }
 0x50f   : > { %v1334_v5 = vpop.xlane.xlu0 %1333 }
 0x510   : > { %4515 = vrcp.f32 %v1334_v5 }
 0x513   : > { %v1337_v9 = vpop.xlane.xlu0 %1336 }
 0x514   : > { %4517 = vrcp.f32 %v1337_v9 }
 0x517   : > { %v1340_v10 = vpop.xlane.xlu1 %1339 }
 0x518   : > { %4519 = vrcp.f32 %v1340_v10 }
 0x51a   : > { %v4516_v6 = vpop.eup %4515 }
 0x51b   : > { %v1346_v7 = vmul.f32 %v4516_v6, %v4508_v54 }
 0x51d   : > { %4225 = vmatpush3.xpose.msk.msra.mxu0 %vm1012_vm2, %v1346_v7 }
 0x51e   : > { %4234 = vmatprep.subr.mxu0 %v4770_v1  ;;  %v4518_v11 = vpop.eup %4517 }
 0x51f   : > { %v1347_v12 = vmul.f32 %v4518_v11, %v4510_v56  ;;  %v2076_v56 = vld [vmem:[%s5606_s25 + $0x10] sm:$0xff] }
 0x520   : > { %v4363_v62 = vpack.c.bf16 %v2077_v57, %v2076_v56 }
 0x522   : > { %v4520_v15 = vpop.eup %4519 }
 0x523   : > { %v1348_v16 = vmul.f32 %v4520_v15, %v4512_v58 }
 0x533   : > { %v1377_v13 = vpop.trf.xlu0 }
 0x534   : > { %4222 = vmatmul.mubr.msk.f32.vlgmr.msra.gmra.mrb[6].mxu1 %vm1012_vm2, %v1377_v13 }
 0x535   : > { %4230 = vmatpush3.xpose.msk.msra.mxu1 %vm1012_vm2, %v1347_v12  ;;  %4231 = vmatprep.mubr.msk.f32.mxu1 %vm4769_vm0, %v4770_v1 }
 0x537   : > { %v1441_v14 = vpop.trf.xlu0 }
 0x538   : > { %4232 = vmatmul.mubr.msk.f32.vlgmr.msra.gmra.mrb[8].mxu1 %vm1012_vm2, %v1441_v14 }
 0x53b   : > { %v1473_v18 = vpop.trf.xlu0 }
 0x53d   : > { %v1409_v17 = vpop.trf.xlu1 }
 0x53e   : > { %4227 = vmatmul.mubr.msk.f32.vlgmr.msra.gmra.mrb[4].mxu0 %vm1012_vm2, %v1409_v17 }
 0x53f   : > { %4235 = vmatpush3.xpose.msk.msra.mxu0 %vm1012_vm2, %v1348_v16  ;;  %4236 = vmatprep.mubr.msk.f32.mxu0 %vm4769_vm0, %v4770_v1 }
 0x540   : > { %4359 = vmatprep.subr.bf16.mxu0 %v4768_v0 }
 0x542   : > { %4237 = vmatmul.mubr.msk.f32.vlgmr.msra.gmra.mrb[6].mxu0 %vm1012_vm2, %v1473_v18 }
 0x543   : > { %4247 = vmatprep.mubr.msk.f32.mxu0 %vm4769_vm0, %v4770_v1  ;;  %4361 = vmatpush3.bf16.msra.mxu0 %v4360_v29  ;;  %v2274_v29 = vld [vmem:[#allocation7 + $0x8] sm:$0xff] }
 0x544   : > { %4362 = vmatprep.subr.bf16.mxu0 %v4768_v0  ;;  %v4371_v31 = vpack.c.bf16 %v2274_v29, %v2273_v28 }
 0x546   : > { %4372 = vmatprep.subr.bf16.mxu1 %v4371_v31 }
 0x547   : > { %4364 = vmatpush3.bf16.msra.mxu0 %v4363_v62  ;;  %4374 = vmatpush3.bf16.msra.mxu1 %v4371_v31 }
 0x548   : > { %4365 = vmatprep.subr.bf16.mxu0 %v4768_v0 }
 0x607   : > { %v1561_v19 = vpop.f32.mrb[6].mxu1 }
 0x608   : > { %v4223_v20 = vpop.f32.mrb[7].mxu1  ;;  %1793 = vxpose.xlu1.b32.start.end [1/1] (short) (narrow) %v1561_v19, 8 }
 0x60b   : > { %v1713_v21 = vpop.f32.mrb[8].mxu1 }
 0x60c   : > { %v4233_v22 = vpop.f32.mrb[9].mxu1  ;;  %1857 = vxpose.xlu1.b32.start.end [1/1] (short) (narrow) %v1713_v21, 8 }
 0x611   : > { %v1637_v23 = vpop.f32.mrb[4].mxu0 }
 0x612   : > { %1825 = vxpose.xlu0.b32.start.end [1/1] (short) (narrow) %v1637_v23, 8  ;;  %v4228_v24 = vpop.f32.mrb[5].mxu0 }
 0x615   : > { %v1789_v25 = vpop.f32.mrb[6].mxu0 }
 0x616   : > { %1889 = vxpose.xlu0.b32.start.end [1/1] (short) (narrow) %v1789_v25, 8  ;;  %v4238_v26 = vpop.f32.mrb[7].mxu0 }
 0x688   : > { %v1809_v30 = vpop.trf.xlu1 }
 0x68c   : > { %v1873_v38 = vpop.trf.xlu1 }
 0x68d   : > { %v1921_v42 = vcombine.low %v1809_v30, %v1873_v38  ;;  %v1922_v43 = vcombine.high %v1809_v30, %v1873_v38  ;;  %v2275_v30 = vld [vmem:[#allocation7 + $0x10] sm:$0xff] }
 0x68e   : > { %v4375_v33 = vpack.c.bf16 %v2276_v32, %v2275_v30 }
 0x68f   : > { %v1929_v48 = vrot.slane %v1921_v42, %v5235_v41  ;;  %v1936_v49 = vrot.slane %v1922_v43, %v5235_v41 }
 0x690   : > { %4376 = vmatprep.subr.bf16.mxu1 %v4375_v33 }
 0x691   : > { %4378 = vmatpush3.bf16.msra.mxu1 %v4375_v33 }
 0x692   : > { %v1841_v39 = vpop.trf.xlu0  ;;  %4282 = vmatprep.subr.mxu1 %v4770_v1 }
 0x696   : > { %v1905_v44 = vpop.trf.xlu0 }
 0x697   : > { %v1937_v45 = vcombine.low %v1841_v39, %v1905_v44  ;;  %v1938_v46 = vcombine.high %v1841_v39, %v1905_v44 }
 0x699   : > { %v1945_v50 = vrot.slane %v1937_v45, %v5235_v41  ;;  %v1952_v51 = vrot.slane %v1938_v46, %v5235_v41 }
 0x69b   : > { %v1953_v52 = vcombine.low %v1929_v48, %v1945_v50  ;;  %v1954_v53 = vcombine.high %v1929_v48, %v1945_v50  ;;  %v1969_v54 = vcombine.low %v1936_v49, %v1952_v51  ;;  %v1970_v55 = vcombine.high %v1936_v49, %v1952_v51  ;;  %v2189_v49 = vld [vmem:[#allocation5] sm:$0xff]  ;;  %v2190_v50 = vld [vmem:[#allocation5 + $0x8] sm:$0xff] }
 0x69c   : > { %v4366_v51 = vpack.c.bf16 %v2190_v50, %v2189_v49 }
 0x69d   : > { %v1961_v58 = vrot.slane %v1953_v52, %v5237_v47  ;;  %v1968_v59 = vrot.slane %v1954_v53, %v5237_v47  ;;  %v1977_v60 = vrot.slane %v1969_v54, %v5237_v47  ;;  %v1984_v61 = vrot.slane %v1970_v55, %v5237_v47  ;;  %v4084_v53 = vld [vmem:[%s5609_s9] ss:$0 sm:$0xff]  ;;  %v2192_v55 = vld [vmem:[#allocation5 + $0x18] sm:$0xff]  ;;  %s5623_s9 = sld [smem:[#allocation34_spill]] }
 0x69e   : > { %v2191_v54 = vld [vmem:[#allocation5 + $0x10] sm:$0xff] }
 0x69f   : > { %v1989_v63 = vcombine.low %v1961_v58, %v1968_v59  ;;  %v4076_v2 = vcombine.high %v1961_v58, %v1968_v59  ;;  %v2005_v3 = vcombine.low %v1977_v60, %v1984_v61  ;;  %v4077_v4 = vcombine.high %v1977_v60, %v1984_v61 }
 0x6a0   : > { %v4369_v58 = vpack.c.bf16 %v2192_v55, %v2191_v54 }
 0x6a1   : > { %v1996_v5 = vrot.slane %v1989_v63, %v5235_v41  ;;  %v2004_v6 = vrot.slane %v4076_v2, %v5235_v41  ;;  %v2012_v7 = vrot.slane %v2005_v3, %v5235_v41  ;;  %v2020_v9 = vrot.slane %v4077_v4, %v5235_v41  ;;  %v4080_v3 = vld [vmem:[%s5543_s16] ss:$0 sm:$0xff] }
 0x6a3   : > { %v2022_v10 = vcombine.high %v1996_v5, %v2004_v6  ;;  %v2038_v11 = vcombine.high %v2012_v7, %v2020_v9  ;;  %v2021_v12 = vcombine.low %v1996_v5, %v2004_v6  ;;  %v2037_v13 = vcombine.low %v2012_v7, %v2020_v9  ;;  %v4081_v5 = vld [vmem:[%s5544_s17] ss:$0 sm:$0xff] }
 0x6a5   : > { %v2036_v14 = vrot.slane %v2022_v10, %v5237_v47  ;;  %v2052_v15 = vrot.slane %v2038_v11, %v5237_v47  ;;  %v2029_v16 = vrot.slane %v2021_v12, %v5237_v47  ;;  %v2045_v17 = vrot.slane %v2037_v13, %v5237_v47  ;;  %v4082_v13 = vld [vmem:[%s5610_s7] ss:$0 sm:$0xff] }
 0x6a7   : > { %v2055_v18 = vcombine.low %v2036_v14, %v2052_v15  ;;  %v2054_v19 = vcombine.high %v2029_v16, %v2045_v17  ;;  %v2053_v20 = vcombine.low %v2029_v16, %v2045_v17  ;;  %v2056_v21 = vcombine.high %v2036_v14, %v2052_v15 }
 0x6a9   : > { %2062 = vrot.lane.b32.xlu0 %v2055_v18, %s5563_s20  ;;  %2058 = vrot.lane.b32.xlu1 %v2054_v19, %s5562_s2 }
 0x6ad   : > { %2066 = vrot.lane.b32.xlu1 %v2056_v21, %s5561_s1  ;;  %s5607_s1 = sld [smem:[#allocation17_spill]] }
 0x6b3   : > { %s776_s2 = scalar_lea.vmem %s5607_s1, %s4115_s15  ;;  %s5615_s15 = sld [smem:[#allocation28_spill]] }
 0x6b4   : > { %v778_v34 = vld [vmem:[%s776_s2] sm:$0xff]  ;;  %v779_v35 = vld [vmem:[%s776_s2 + $0x8] sm:$0xff]  ;;  %s5620_s2 = sld [smem:[#allocation32_spill]] }
 0x6b5   : > { %4269 = vmatprep.mubr.msk.f32.mxu1 %vm791_vm1, %v778_v34 }
 0x6b6   : > { %4270 = vmatmul.mubr.msk.f32.vlgmr.msra.gmra.mrb[10].mxu1 %vm791_vm1, %v779_v35 }
 0x6b7   : > { %4284 = vmatprep.mubr.msk.f32.mxu1 %vm4769_vm0, %v4770_v1 }
 0x71b   : > { %v2059_v22 = vpop.permute.xlu1 %2058  ;;  %v2063_v23 = vpop.permute.xlu0 %2062 }
 0x71c   : > { %v2069_v24 = vsel %vm1012_vm2, %v2053_v20, %v2059_v22 }
 0x71d   : > { %v2071_v26 = vsel %vm2070_vm3, %v2069_v24, %v2063_v23 }
 0x71f   : > { %v2067_v25 = vpop.permute.xlu1 %2066 }
 0x720   : > { %v2073_v27 = vsel %vm2072_vm4, %v2071_v26, %v2067_v25 }
 0x721   : > { %4248 = vmatmul.mubr.msk.f32.vlgmr.msra.gmra.mrb[8].mxu0 %vm791_vm1, %v2073_v27 }
 0x722   : > { %4258 = vmatprep.mubr.msk.f32.mxu0 %vm4769_vm0, %v4770_v1  ;;  %4367 = vmatpush3.bf16.msra.mxu0 %v4366_v51 }
 0x723   : > { %4368 = vmatprep.subr.bf16.mxu0 %v4768_v0 }
 0x726   : > { %4370 = vmatpush3.bf16.msra.mxu0 %v4369_v58 }
 0x727   : > { %4272 = vmatprep.subr.mxu0 %v4770_v1 }
 0x789   : > { %v4271_v52 = vpop.f32.mrb[10].mxu1 }
 0x78a   : > { %v5290_v56 = vadd.f32 %v4271_v52, %v4084_v53 }
 0x7f4   : > { %v2154_v37 = vpop.f32.mrb[8].mxu0 }
 0x7f5   : > { %v2155_v38 = vadd.f32 %v4078_v36, %v2154_v37  ;;  %v4249_v39 = vpop.f32.mrb[9].mxu0 }
 0x7f7   : > { %v2158_v40 = vadd.f32 %v2155_v38, %v5162_v8  ;;  %v2356_v8 = vpop.f32.mrb[11].mxu1 }
 0x7f8   : > { %v5292_v57 = vadd.f32 %v4084_v53, %v2356_v8 }
 0x7f9   : > { %v2159_v42 = vsel %vm791_vm1, %v2158_v40, 0.0 }
 0x7fa   : > { %2160 = vadd.xlane.f32.xlu1 %v2159_v42 }
 0x80b   : > { %2374 = vrot.lane.b32.xlu1 %v5292_v57, %s4772_s26 }
 0x80f   : > { %2380 = vrot.lane.b32.xlu1 %v5292_v57, %s4774_s14 }
 0x813   : > { %2386 = vrot.lane.b32.xlu1 %v5292_v57, %s4771_s4 }
 0x817   : > { %2388 = vrot.lane.b32.xlu1 %v5290_v56, %s4771_s4 }
 0x840   : > { %2392 = vxpose.xlu1.b32.start [1/2] (short) (narrow) %v5292_v57, 8 }
 0x844   : > { %2393 = vxpose.xlu1.b32.end [2/2] (short) (narrow) %v5290_v56, 8 }
 0x887   : > { %v2161_v43 = vpop.xlane.xlu1 %2160 }
 0x888   : > { %v2163_v44 = vmul.f32 0.03125, %v2161_v43 }
 0x88a   : > { %v2164_v45 = vsub.f32 %v2158_v40, %v2163_v44 }
 0x88b   : > { %v2375_v62 = vpop.permute.xlu1 %2374 }
 0x88c   : > { %v2165_v46 = vmul.f32 %v2164_v45, %v2164_v45 }
 0x88e   : > { %v2166_v48 = vsel %vm791_vm1, %v2165_v46, 0.0 }
 0x88f   : > { %2167 = vadd.xlane.f32.xlu0 %v2166_v48  ;;  %v5325_v9 = vpop.permute.xlu1 %2380 }
 0x893   : > { %v2387_v10 = vpop.permute.xlu1 %2386 }
 0x897   : > { %v2389_v11 = vpop.permute.xlu1 %2388 }
 0x8a5   : > { %2376 = vrot.lane.b32.xlu0 %v5290_v56, %s4772_s26 }
 0x8a9   : > { %2382 = vrot.lane.b32.xlu0 %v5290_v56, %s4774_s14 }
 0x8c0   : > { %v2408_v12 = vpop.trf.xlu1 }
 0x8c7   : > { %2424 = vxpose.xlu0.b32.start [1/2] (short) (narrow) %v2375_v62, 8 }
 0x91c   : > { %v2168_v59 = vpop.xlane.xlu0 %2167 }
 0x91d   : > { %v2169_v60 = vmul.f32 0.03125, %v2168_v59 }
 0x91f   : > { %v2170_v61 = vadd.f32 1e-05, %v2169_v60 }
 0x920   : > { %v5310_v63 = vpop.permute.xlu0 %2376 }
 0x921   : > { %4521 = vrsqrt.f32 %v2170_v61  ;;  %2425 = vxpose.xlu0.b32.end [2/2] (short) (narrow) %v5310_v63, 8 }
 0x924   : > { %v5331_v14 = vpop.permute.xlu0 %2382 }
 0x92b   : > { %v4522_v2 = vpop.eup %4521 }
 0x92c   : > { %v2172_v4 = vmul.f32 %v4522_v2, %v2164_v45 }
 0x92e   : > { %v2180_v6 = vmul.f32 %v4080_v3, %v2172_v4 }
 0x930   : > { %v5319_v7 = vadd.f32 %v4081_v5, %v2180_v6 }
 0x932   : > { %4259 = vmatmul.mubr.msk.f32.vlgmr.msra.gmra.mrb[10].mxu0 %vm791_vm1, %v5319_v7 }
 0x933   : > { %4274 = vmatprep.mubr.msk.f32.mxu0 %vm4769_vm0, %v4770_v1  ;;  %4273 = vmatpush3.msra.mxu0 %v2408_v12 }
 0x934   : > { %4277 = vmatprep.subr.mxu0 %v4770_v1 }
 0x99d   : > { %v2440_v18 = vpop.trf.xlu0 }
 0xa05   : > { %v2269_v15 = vpop.f32.mrb[10].mxu0 }
 0xa06   : > { %v2270_v16 = vadd.f32 %v4082_v13, %v2269_v15  ;;  %v4260_v17 = vpop.f32.mrb[11].mxu0 }
 0xa08   : > { %2368 = vrot.lane.b32.xlu1 %v2270_v16, %s4774_s14  ;;  %2366 = vrot.lane.b32.xlu0 %v2270_v16, %s4772_s26  ;;  %s5612_s26 = smov 16   ;;  %s5613_s14 = smov 8  }
 0xa09   : > { %4275 = vmatmul.mubr.msk.f32.vlgmr.msra.gmra.mrb[12].mxu0 %vm1012_vm2, %v2270_v16 }
 0xa0a   : > { %4278 = vmatpush3.msra.mxu0 %v2440_v18  ;;  %4279 = vmatprep.mubr.msk.f32.mxu0 %vm4769_vm0, %v4770_v1 }
 0xa0b   : > { %4287 = vmatprep.subr.mxu0 %v4770_v1 }
 0xa0c   : > { %2370 = vrot.lane.b32.xlu0 %v2270_v16, %s4771_s4  ;;  %s5611_s4 = smov 96  }
 0xa2a   : > { %2456 = vxpose.xlu0.b32.start [1/2] (short) (narrow) %v5325_v9, 8 }
 0xa2e   : > { %2457 = vxpose.xlu0.b32.end [2/2] (short) (narrow) %v5331_v14, 8 }
 0xa31   : > { %2488 = vxpose.xlu1.b32.start [1/2] (short) (narrow) %v2387_v10, 8 }
 0xa35   : > { %2489 = vxpose.xlu1.b32.end [2/2] (short) (narrow) %v2389_v11, 8 }
 0xa7a   : > { %v2367_v19 = vpop.permute.xlu0 %2366  ;;  %v2369_v22 = vpop.permute.xlu1 %2368 }
 0xa7b   : > { %4280 = vmatmul.mubr.msk.f32.vlgmr.msra.gmra.mrb[14].mxu0 %vm1012_vm2, %v2367_v19 }
 0xa7c   : > { %4289 = vmatprep.mubr.msk.f32.mxu0 %vm4769_vm0, %v4770_v1 }
 0xa7e   : > { %v2371_v20 = vpop.permute.xlu0 %2370 }
 0xaaa   : > { %v2472_v21 = vpop.trf.xlu0 }
 0xaab   : > { %4283 = vmatpush3.msra.mxu1 %v2472_v21 }
 0xaac   : > { %4285 = vmatmul.mubr.msk.f32.vlgmr.msra.gmra.mrb[12].mxu1 %vm1012_vm2, %v2369_v22  ;;  %4292 = vmatprep.subr.mxu1 %v4770_v1 }
 0xaad   : > { %4294 = vmatprep.mubr.msk.f32.mxu1 %vm4769_vm0, %v4770_v1 }
 0xab1   : > { %v2504_v23 = vpop.trf.xlu1 }
 0xab2   : > { %4288 = vmatpush3.msra.mxu0 %v2504_v23 }
 0xab3   : > { %4290 = vmatmul.mubr.msk.f32.vlgmr.msra.gmra.mrb[16].mxu0 %vm1012_vm2, %v2371_v20  ;;  %4297 = vmatprep.subr.mxu0 %v4770_v1 }
 0xab4   : > { %4299 = vmatprep.mubr.msk.f32.mxu0 %vm4769_vm0, %v4770_v1 }
 0xadc   : > { %v2588_v24 = vpop.f32.mrb[12].mxu0 }
 0xadd   : > { %v2808_v25 = vmul.f32 0.35355338, %v2588_v24  ;;  %v4276_v26 = vpop.f32.mrb[13].mxu0 }
 0xadf   : > { %v2812_v27 = vsel %vm2070_vm3, %v2808_v25, -inf }
 0xae0   : > { %2813 = vmax.xlane.f32.xlu0 %v2812_v27 }
 0xb4e   : > { %v2660_v28 = vpop.f32.mrb[14].mxu0 }
 0xb4f   : > { %v2809_v29 = vmul.f32 0.35355338, %v2660_v28  ;;  %v4281_v30 = vpop.f32.mrb[15].mxu0 }
 0xb51   : > { %v2815_v31 = vsel %vm2070_vm3, %v2809_v29, -inf }
 0xb52   : > { %2816 = vmax.xlane.f32.xlu1 %v2815_v31 }
 0xb63   : > { %2860 = vrot.lane.b32.xlu1 %v2375_v62, %s5611_s4 }
 0xb67   : > { %2858 = vrot.lane.b32.xlu1 %v5290_v56, %s5611_s4 }
 0xb6d   : > { %v2814_v48 = vpop.xlane.xlu0 %2813 }
 0xb6e   : > { %v2824_v56 = vsub.f32 %v2808_v25, %v2814_v48 }
 0xb70   : > { %v2828_v58 = vmul.f32 1.442695, %v2824_v56 }
 0xb7f   : > { %v2732_v32 = vpop.f32.mrb[12].mxu1 }
 0xb80   : > { %v2810_v33 = vmul.f32 0.35355338, %v2732_v32  ;;  %v4286_v34 = vpop.f32.mrb[13].mxu1 }
 0xb81   : > { %v3592_v34 = vld [vmem:[#allocation8 + $0x8] sm:$0xff] }
 0xb82   : > { %v2818_v35 = vsel %vm2070_vm3, %v2810_v33, -inf }
 0xb83   : > { %2819 = vmax.xlane.f32.xlu0 %v2818_v35 }
 0xb86   : > { %v2804_v36 = vpop.f32.mrb[16].mxu0 }
 0xb87   : > { %v2811_v37 = vmul.f32 0.35355338, %v2804_v36  ;;  %v4291_v38 = vpop.f32.mrb[17].mxu0 }
 0xb89   : > { %v2821_v39 = vsel %vm2070_vm3, %v2811_v37, -inf }
 0xb8b   : > { %2822 = vmax.xlane.f32.xlu1 %v2821_v39 }
 0xb99   : > { %2856 = vrot.lane.b32.xlu0 %v5292_v57, %s5611_s4 }
 0xb9d   : > { %2862 = vrot.lane.b32.xlu0 %v5310_v63, %s5611_s4 }
 0xba1   : > { %2868 = vrot.lane.b32.xlu0 %v2387_v10, %s5611_s4 }
 0xba5   : > { %2870 = vrot.lane.b32.xlu0 %v2389_v11, %s5611_s4 }
 0xbdf   : > { %v2817_v40 = vpop.xlane.xlu1 %2816 }
 0xbe0   : > { %v2825_v42 = vsub.f32 %v2809_v29, %v2817_v40 }
 0xbe2   : > { %v2830_v43 = vmul.f32 1.442695, %v2825_v42 }
 0xbe3   : > { %v2861_v44 = vpop.permute.xlu1 %2860 }
 0xbe4   : > { %4523 = vpow2.f32 %v2830_v43  ;;  %2912 = vxpose.xlu1.b32.start [1/2] (short) (narrow) %v2861_v44, 8 }
 0xbe7   : > { %v2859_v55 = vpop.permute.xlu1 %2858 }
 0xbee   : > { %v4524_v45 = vpop.eup %4523 }
 0xbef   : > { %v2839_v46 = vsel %vm2070_vm3, %v4524_v45, 0.0 }
 0xbf0   : > { %2840 = vadd.xlane.f32.xlu0 %v2839_v46 }
 0xc10   : > { %v2820_v49 = vpop.xlane.xlu0 %2819 }
 0xc11   : > { %v2826_v50 = vsub.f32 %v2810_v33, %v2820_v49  ;;  %v3591_v33 = vld [vmem:[#allocation8] sm:$0xff] }
 0xc12   : > { %v4380_v35 = vpack.c.bf16 %v3592_v34, %v3591_v33 }
 0xc13   : > { %v2832_v51 = vmul.f32 1.442695, %v2826_v50 }
 0xc14   : > { %v2857_v52 = vpop.permute.xlu0 %2856 }
 0xc15   : > { %4525 = vpow2.f32 %v2832_v51 }
 0xc16   : > { %4527 = vpow2.f32 %v2828_v58 }
 0xc18   : > { %v2863_v53 = vpop.permute.xlu0 %2862  ;;  %v2823_v57 = vpop.xlane.xlu1 %2822 }
 0xc19   : > { %2913 = vxpose.xlu1.b32.end [2/2] (short) (narrow) %v2863_v53, 8  ;;  %v2827_v59 = vsub.f32 %v2811_v37, %v2823_v57 }
 0xc1b   : > { %v2834_v60 = vmul.f32 1.442695, %v2827_v59 }
 0xc1c   : > { %v2869_v3 = vpop.permute.xlu0 %2868 }
 0xc1d   : > { %4529 = vpow2.f32 %v2834_v60 }
 0xc1f   : > { %v4526_v8 = vpop.eup %4525 }
 0xc20   : > { %v2842_v54 = vsel %vm2070_vm3, %v4526_v8, 0.0  ;;  %v4528_v61 = vpop.eup %4527  ;;  %v2871_v4 = vpop.permute.xlu0 %2870 }
 0xc21   : > { %2843 = vadd.xlane.f32.xlu0 %v2842_v54  ;;  %v2836_v62 = vsel %vm2070_vm3, %v4528_v61, 0.0  ;;  %v3594_v54 = vld [vmem:[#allocation8 + $0x18] sm:$0xff] }
 0xc27   : > { %v4530_v63 = vpop.eup %4529 }
 0xc28   : > { %v2845_v2 = vsel %vm2070_vm3, %v4530_v63, 0.0 }
 0xc37   : > { %2864 = vrot.lane.b32.xlu1 %v5325_v9, %s5611_s4 }
 0xc3b   : > { %2866 = vrot.lane.b32.xlu1 %v5331_v14, %s5611_s4  ;;  %s5616_s4 = sld [smem:[#allocation30_spill]] }
 0xc4e   : > { %2880 = vxpose.xlu0.b32.start [1/2] (short) (narrow) %v2857_v52, 8 }
 0xc52   : > { %2881 = vxpose.xlu0.b32.end [2/2] (short) (narrow) %v2859_v55, 8 }
 0xc5f   : > { %2837 = vadd.xlane.f32.xlu1 %v2836_v62 }
 0xc63   : > { %2846 = vadd.xlane.f32.xlu1 %v2845_v2 }
 0xc7d   : > { %v2841_v5 = vpop.xlane.xlu0 %2840 }
 0xc7e   : > { %4531 = vrcp.f32 %v2841_v5 }
 0xc88   : > { %v4532_v6 = vpop.eup %4531 }
 0xc89   : > { %v2853_v9 = vmul.f32 %v4532_v6, %v4524_v45 }
 0xc8b   : > { %4298 = vmatpush3.xpose.msk.msra.mxu0 %vm2070_vm3, %v2853_v9 }
 0xc8c   : > { %4307 = vmatprep.subr.mxu0 %v4770_v1 }
 0xc95   : > { %v2928_v10 = vpop.trf.xlu1 }
 0xc96   : > { %2976 = vxpose.xlu1.b32.start [1/2] (short) (narrow) %v2869_v3, 8  ;;  %4300 = vmatmul.mubr.msk.f32.vlgmr.msra.gmra.mrb[18].mxu0 %vm2070_vm3, %v2928_v10 }
 0xc97   : > { %4309 = vmatprep.mubr.msk.f32.mxu0 %vm4769_vm0, %v4770_v1 }
 0xc9a   : > { %2977 = vxpose.xlu1.b32.end [2/2] (short) (narrow) %v2871_v4, 8 }
 0xca9   : > { %v2865_v11 = vpop.permute.xlu1 %2864 }
 0xcaa   : > { %2944 = vxpose.xlu0.b32.start [1/2] (short) (narrow) %v2865_v11, 8 }
 0xcad   : > { %v2867_v12 = vpop.permute.xlu1 %2866 }
 0xcae   : > { %2945 = vxpose.xlu0.b32.end [2/2] (short) (narrow) %v2867_v12, 8  ;;  %v2844_v13 = vpop.xlane.xlu0 %2843 }
 0xcce   : > { %v2896_v19 = vpop.trf.xlu0 }
 0xcec   : > { %v2838_v14 = vpop.xlane.xlu1 %2837 }
 0xced   : > { %4533 = vrcp.f32 %v2838_v14 }
 0xcee   : > { %4535 = vrcp.f32 %v2844_v13 }
 0xcf0   : > { %v2847_v15 = vpop.xlane.xlu1 %2846 }
 0xcf1   : > { %4537 = vrcp.f32 %v2847_v15 }
 0xcf7   : > { %v4534_v16 = vpop.eup %4533 }
 0xcf8   : > { %v2852_v17 = vmul.f32 %v4534_v16, %v4528_v61  ;;  %v4536_v18 = vpop.eup %4535 }
 0xcf9   : > { %v2854_v21 = vmul.f32 %v4536_v18, %v4526_v8  ;;  %v3593_v8 = vld [vmem:[#allocation8 + $0x10] sm:$0xff] }
 0xcfa   : > { %4293 = vmatpush3.xpose.msk.msra.mxu1 %vm2070_vm3, %v2852_v17  ;;  %v4383_v59 = vpack.c.bf16 %v3594_v54, %v3593_v8  ;;  %v4103_v8 = vld [vmem:[%s5616_s4] ss:$0 sm:$0xff]  ;;  %s5618_s4 = sld [smem:[#allocation27_spill]] }
 0xcfb   : > { %v4538_v20 = vpop.eup %4537  ;;  %4302 = vmatprep.subr.mxu1 %v4770_v1 }
 0xcfc   : > { %v2855_v22 = vmul.f32 %v4538_v20, %v4530_v63 }
 0xcfd   : > { %4295 = vmatmul.mubr.msk.f32.vlgmr.msra.gmra.mrb[14].mxu1 %vm2070_vm3, %v2896_v19 }
 0xcfe   : > { %4303 = vmatpush3.xpose.msk.msra.mxu1 %vm2070_vm3, %v2854_v21  ;;  %4308 = vmatpush3.xpose.msk.msra.mxu0 %vm2070_vm3, %v2855_v22 }
 0xcff   : > { %4304 = vmatprep.mubr.msk.f32.mxu1 %vm4769_vm0, %v4770_v1  ;;  %4379 = vmatprep.subr.bf16.mxu1 %v4768_v0 }
 0xd00   : > { %4385 = vmatprep.subr.bf16.mxu0 %v4768_v0 }
 0xd16   : > { %v2992_v23 = vpop.trf.xlu1 }
 0xd17   : > { %4310 = vmatmul.mubr.msk.f32.vlgmr.msra.gmra.mrb[20].mxu0 %vm2070_vm3, %v2992_v23 }
 0xd18   : > { %4331 = vmatprep.mubr.msk.f32.mxu0 %vm4769_vm0, %v4770_v1 }
 0xd2a   : > { %v2960_v24 = vpop.trf.xlu0 }
 0xd2b   : > { %4305 = vmatmul.mubr.msk.f32.vlgmr.msra.gmra.mrb[16].mxu1 %vm2070_vm3, %v2960_v24 }
 0xd2c   : > { %4320 = vmatprep.mubr.msk.f32.mxu1 %vm4769_vm0, %v4770_v1  ;;  %4381 = vmatpush3.bf16.msra.mxu1 %v4380_v35  ;;  %v3706_v35 = vld [vmem:[#allocation10 + $0x8] sm:$0xff] }
 0xd2d   : > { %4382 = vmatprep.subr.bf16.mxu1 %v4768_v0 }
 0xd30   : > { %4384 = vmatpush3.bf16.msra.mxu1 %v4383_v59 }
 0xd31   : > { %4391 = vmatprep.subr.bf16.mxu1 %v4768_v0 }
 0xd69   : > { %v3156_v25 = vpop.f32.mrb[18].mxu0 }
 0xd6a   : > { %v4301_v26 = vpop.f32.mrb[19].mxu0 }
 0xdd0   : > { %v3080_v27 = vpop.f32.mrb[14].mxu1 }
 0xdd1   : > { %3312 = vxpose.xlu0.b32.start.end [1/1] (short) (narrow) %v3080_v27, 8  ;;  %v4296_v28 = vpop.f32.mrb[15].mxu1 }
 0xdd5   : > { %3344 = vxpose.xlu0.b32.start.end [1/1] (short) (narrow) %v3156_v25, 8 }
 0xdea   : > { %v3308_v29 = vpop.f32.mrb[20].mxu0 }
 0xdeb   : > { %3408 = vxpose.xlu0.b32.start.end [1/1] (short) (narrow) %v3308_v29, 8  ;;  %v4311_v30 = vpop.f32.mrb[21].mxu0 }
 0xdfe   : > { %v3232_v31 = vpop.f32.mrb[16].mxu1 }
 0xdff   : > { %3376 = vxpose.xlu1.b32.start.end [1/1] (short) (narrow) %v3232_v31, 8  ;;  %v4306_v32 = vpop.f32.mrb[17].mxu1 }
 0xe51   : > { %v3328_v36 = vpop.trf.xlu0 }
 0xe55   : > { %v3360_v37 = vpop.trf.xlu0 }
 0xe6b   : > { %v3424_v38 = vpop.trf.xlu0 }
 0xe6c   : > { %v3456_v39 = vcombine.low %v3360_v37, %v3424_v38  ;;  %v3457_v40 = vcombine.high %v3360_v37, %v3424_v38  ;;  %v3707_v37 = vld [vmem:[#allocation10 + $0x10] sm:$0xff]  ;;  %v3708_v38 = vld [vmem:[#allocation10 + $0x18] sm:$0xff] }
 0xe6e   : > { %v3464_v45 = vrot.slane %v3456_v39, %v5235_v41  ;;  %v3471_v46 = vrot.slane %v3457_v40, %v5235_v41  ;;  %v4389_v39 = vpack.c.bf16 %v3708_v38, %v3707_v37  ;;  %v3791_v40 = vld [vmem:[%s5615_s15 + $0x8] sm:$0xff] }
 0xe7f   : > { %v3392_v42 = vpop.trf.xlu1 }
 0xe80   : > { %v3440_v43 = vcombine.low %v3328_v36, %v3392_v42  ;;  %v3441_v44 = vcombine.high %v3328_v36, %v3392_v42  ;;  %v3792_v42 = vld [vmem:[%s5615_s15 + $0x10] sm:$0xff] }
 0xe82   : > { %v3448_v48 = vrot.slane %v3440_v43, %v5235_v41  ;;  %v3455_v49 = vrot.slane %v3441_v44, %v5235_v41  ;;  %v3793_v44 = vld [vmem:[%s5615_s15 + $0x18] sm:$0xff] }
 0xe84   : > { %v3472_v50 = vcombine.low %v3448_v48, %v3464_v45  ;;  %v3473_v51 = vcombine.high %v3448_v48, %v3464_v45  ;;  %v3488_v52 = vcombine.low %v3455_v49, %v3471_v46  ;;  %v3489_v53 = vcombine.high %v3455_v49, %v3471_v46  ;;  %v3794_v46 = vld [vmem:[%s5615_s15 + $0x20] sm:$0xff]  ;;  %v3795_v48 = vld [vmem:[%s5615_s15 + $0x28] sm:$0xff] }
 0xe85   : > { %v4395_v45 = vpack.c.bf16 %v3793_v44, %v3792_v42  ;;  %v4398_v49 = vpack.c.bf16 %v3795_v48, %v3794_v46 }
 0xe86   : > { %v3480_v55 = vrot.slane %v3472_v50, %v5237_v47  ;;  %v3487_v56 = vrot.slane %v3473_v51, %v5237_v47  ;;  %v3496_v57 = vrot.slane %v3488_v52, %v5237_v47  ;;  %v3503_v58 = vrot.slane %v3489_v53, %v5237_v47 }
 0xe88   : > { %v3508_v60 = vcombine.low %v3480_v55, %v3487_v56  ;;  %v4099_v61 = vcombine.high %v3480_v55, %v3487_v56  ;;  %v3524_v62 = vcombine.low %v3496_v57, %v3503_v58  ;;  %v4100_v63 = vcombine.high %v3496_v57, %v3503_v58  ;;  %v3797_v58 = vld [vmem:[%s5615_s15 + $0x38] sm:$0xff] }
 0xe8a   : > { %v3515_v2 = vrot.slane %v3508_v60, %v5235_v41  ;;  %v3523_v3 = vrot.slane %v4099_v61, %v5235_v41  ;;  %v3531_v4 = vrot.slane %v3524_v62, %v5235_v41  ;;  %v3539_v5 = vrot.slane %v4100_v63, %v5235_v41  ;;  %v4105_v60 = vld [vmem:[%s5618_s4] ss:$0 sm:$0xff]  ;;  %s4112_s4 = sshll.u32 %s4918_s23, 7  ;;  %s4781_s23 = smov [#allocation11]  }
 0xe8b   : > { %s5482_s10 = scalar_lea.hbm %s5623_s9, %s4112_s4 }
 0xe8c   : > { %v3541_v6 = vcombine.high %v3515_v2, %v3523_v3  ;;  %v3557_v9 = vcombine.high %v3531_v4, %v3539_v5  ;;  %v3540_v10 = vcombine.low %v3515_v2, %v3523_v3  ;;  %v3556_v11 = vcombine.low %v3531_v4, %v3539_v5 }
 0xe8e   : > { %v3555_v12 = vrot.slane %v3541_v6, %v5237_v47  ;;  %v3571_v13 = vrot.slane %v3557_v9, %v5237_v47  ;;  %v3548_v14 = vrot.slane %v3540_v10, %v5237_v47  ;;  %v3564_v15 = vrot.slane %v3556_v11, %v5237_v47  ;;  %v4101_v47 = vld [vmem:[%s5538_s11] ss:$0 sm:$0xff] }
 0xe90   : > { %v3574_v16 = vcombine.low %v3555_v12, %v3571_v13  ;;  %v3573_v17 = vcombine.high %v3548_v14, %v3564_v15  ;;  %v3572_v18 = vcombine.low %v3548_v14, %v3564_v15  ;;  %v3575_v41 = vcombine.high %v3555_v12, %v3571_v13 }
 0xe92   : > { %3581 = vrot.lane.b32.xlu0 %v3574_v16, %s5612_s26  ;;  %3577 = vrot.lane.b32.xlu1 %v3573_v17, %s5613_s14  ;;  %s5622_s26 = sshll.u32 %s5125_s8, 3 }
 0xe93   : > { %s771_s14 = scalar_lea.vmem [#allocation11], %s5622_s26 }
 0xe96   : > { %3585 = vrot.lane.b32.xlu1 %v3575_v41, %s5614_s24  ;;  %s5617_s24 = sld [smem:[#allocation31_spill]] }
 0xe9c   : > { %v4104_v55 = vld [vmem:[%s5617_s24] ss:$0 sm:$0xff]  ;;  %s5619_s24 = sld [smem:[#allocation29_spill]] }
 0xea2   : > { %v4107_v3 = vld [vmem:[%s5619_s24] ss:$0 sm:$0xff]  ;;  %s3924_s24 = sshll.u32 %s771_s14, 4  ;;  %s5484_s24 = int_to_ptr.vmem [resolvable:$true] %s3924_s24 }
 0xea3   : > { %s4685_s20 = scalar_lea.vmem %s5484_s24, 128 }
 0xea4   : > { %p4686_p5 = scmp.ne.s32.totalorder %s5484_s24, %s4685_s20 }
 0xea6   : > { %p4687_p9 = pnand %p4686_p5, %p5624_p7 }
 0xea8   : > { %p4688_p12 = pneg %p4687_p9 }
 0xf04   : > { %v3578_v19 = vpop.permute.xlu1 %3577  ;;  %v3582_v20 = vpop.permute.xlu0 %3581 }
 0xf05   : > { %v3588_v21 = vsel %vm1012_vm2, %v3572_v18, %v3578_v19  ;;  %v4109_v19 = vld [vmem:[%s5620_s2] ss:$0 sm:$0xff]  ;;  %s4689_s2 = sshll.u32 %s4781_s23, 4  ;;  %s4690_s2 = int_to_ptr.vmem [resolvable:$false] %s4689_s2 }
 0xf06   : > { %v3589_v23 = vsel %vm2070_vm3, %v3588_v21, %v3582_v20  ;;  %v4110_v21 = vld [vmem:[%s5621_s19] ss:$0 sm:$0xff]  ;;  %s4691_s1 = scalar_lea.vmem %s4690_s2, 256  ;;  %p4692_p3 = scmp.lt.s32.totalorder %s5484_s24, %s4690_s2 }
 0xf07   : > { %p4693_p13 = scmp.lt.s32.totalorder %s4691_s1, %s4685_s20 }
 0xf08   : > { %v3586_v22 = vpop.permute.xlu1 %3585 }
 0xf09   : > { %v3590_v24 = vsel %vm2072_vm4, %v3589_v23, %v3586_v22  ;;  %p4694_p0 = por %p4693_p13, %p4692_p3 }
 0xf0a   : > { %4321 = vmatmul.mubr.msk.f32.vlgmr.msra.gmra.mrb[18].mxu1 %vm791_vm1, %v3590_v24 }
 0xf0b   : > { %4350 = vmatprep.mubr.msk.f32.mxu1 %vm4769_vm0, %v4770_v1  ;;  %v3705_v1 = vld [vmem:[#allocation10] sm:$0xff]  ;;  %p4695_p2 = pnand %p4694_p0, %p4688_p12 }
 0xf0c   : > { %v4386_v36 = vpack.c.bf16 %v3706_v35, %v3705_v1 }
 0xf0e   : > { %4387 = vmatpush3.bf16.msra.mxu0 %v4386_v36 }
 0xf0f   : > { %4388 = vmatprep.subr.bf16.mxu0 %v4768_v0 }
 0xf12   : > { %4390 = vmatpush3.bf16.msra.mxu0 %v4389_v39 }
 0xfdd   : > { %v3671_v25 = vpop.f32.mrb[18].mxu1 }
 0xfde   : > { %v3672_v26 = vadd.f32 %v4101_v47, %v3671_v25  ;;  %v4322_v27 = vpop.f32.mrb[19].mxu1 }
 0xfe0   : > { %v3675_v28 = vadd.f32 %v3672_v26, %v5319_v7  ;;  %v3790_v7 = vld [vmem:[%s5615_s15] sm:$0xff] }
 0xfe1   : > { %v4392_v43 = vpack.c.bf16 %v3791_v40, %v3790_v7 }
 0xfe2   : > { %v3676_v29 = vsel %vm791_vm1, %v3675_v28, 0.0 }
 0xfe3   : > { %3677 = vadd.xlane.f32.xlu1 %v3676_v29  ;;  %4393 = vmatpush3.bf16.msra.mxu1 %v4392_v43 }
 0xfe4   : > { %4394 = vmatprep.subr.bf16.mxu1 %v4768_v0 }
 0xfe7   : > { %4396 = vmatpush3.bf16.msra.mxu1 %v4395_v45 }
 0xfe8   : > { %4397 = vmatprep.subr.bf16.mxu1 %v4768_v0 }
 0xfeb   : > { %4399 = vmatpush3.bf16.msra.mxu1 %v4398_v49 }
 0xfec   : > { %4400 = vmatprep.subr.bf16.mxu1 %v4768_v0  ;;  %v3796_v0 = vld [vmem:[%s5615_s15 + $0x30] sm:$0xff] }
 0xfed   : > { %v4401_v59 = vpack.c.bf16 %v3797_v58, %v3796_v0 }
 0xfef   : > { %4402 = vmatpush3.bf16.msra.mxu1 %v4401_v59 }
0x1070   : > { %v3678_v30 = vpop.xlane.xlu1 %3677 }
0x1071   : > { %v3679_v31 = vmul.f32 0.03125, %v3678_v30 }
0x1073   : > { %v3680_v32 = vsub.f32 %v3675_v28, %v3679_v31 }
0x1075   : > { %v3681_v33 = vmul.f32 %v3680_v32, %v3680_v32 }
0x1077   : > { %v3682_v34 = vsel %vm791_vm1, %v3681_v33, 0.0 }
0x1078   : > { %3683 = vadd.xlane.f32.xlu0 %v3682_v34 }
0x1105   : > { %v3684_v50 = vpop.xlane.xlu0 %3683 }
0x1106   : > { %v3685_v51 = vmul.f32 0.03125, %v3684_v50 }
0x1108   : > { %v3686_v52 = vadd.f32 1e-05, %v3685_v51 }
0x110a   : > { %4539 = vrsqrt.f32 %v3686_v52 }
0x1114   : > { %v4540_v53 = vpop.eup %4539 }
0x1115   : > { %v3688_v54 = vmul.f32 %v4540_v53, %v3680_v32 }
0x1117   : > { %v3696_v56 = vmul.f32 %v4103_v8, %v3688_v54 }
0x1119   : > { %v3704_v57 = vadd.f32 %v4104_v55, %v3696_v56 }
0x111b   : > { %4332 = vmatmul.mubr.msk.f32.vlgmr.msra.gmra.mrb[22].mxu0 %vm791_vm1, %v3704_v57 }
0x11ee   : > { %v3785_v61 = vpop.f32.mrb[22].mxu0 }
0x11ef   : > { %v3786_v62 = vadd.f32 %v4105_v60, %v3785_v61  ;;  %v4333_v63 = vpop.f32.mrb[23].mxu0 }
0x11f1   : > { %v3789_v2 = vmax.f32 %v3786_v62, 0.0 }
0x11f3   : > { %4351 = vmatmul.mubr.msk.f32.vlgmr.msra.gmra.mrb[20].mxu1 %vm3805_vm5, %v3789_v2 }
0x12c6   : > { %v3875_v4 = vpop.f32.mrb[20].mxu1 }
0x12c7   : > { %v3876_v5 = vadd.f32 %v4107_v3, %v3875_v4  ;;  %v4352_v6 = vpop.f32.mrb[21].mxu1 }
0x12c9   : > { %v3879_v9 = vadd.f32 %v3876_v5, %v3704_v57 }
0x12cb   : > { %v3880_v10 = vsel %vm791_vm1, %v3879_v9, 0.0 }
0x12cc   : > { %3881 = vadd.xlane.f32.xlu1 %v3880_v10 }
0x1359   : > { %v3882_v11 = vpop.xlane.xlu1 %3881 }
0x135a   : > { %v3883_v12 = vmul.f32 0.03125, %v3882_v11 }
0x135c   : > { %v3884_v13 = vsub.f32 %v3879_v9, %v3883_v12 }
0x135e   : > { %v3885_v14 = vmul.f32 %v3884_v13, %v3884_v13 }
0x1360   : > { %v3886_v15 = vsel %vm791_vm1, %v3885_v14, 0.0 }
0x1361   : > { %3887 = vadd.xlane.f32.xlu0 %v3886_v15 }
0x13ee   : > { %v3888_v16 = vpop.xlane.xlu0 %3887 }
0x13ef   : > { %v3889_v17 = vmul.f32 0.03125, %v3888_v16 }
0x13f1   : > { %v3890_v18 = vadd.f32 1e-05, %v3889_v17 }
0x13f3   : > { %4541 = vrsqrt.f32 %v3890_v18 }
0x13fd   : > { %v4542_v41 = vpop.eup %4541 }
0x13fe   : > { %v3892_v20 = vmul.f32 %v4542_v41, %v3884_v13 }
0x1400   : > { %v3900_v22 = vmul.f32 %v4109_v19, %v3892_v20 }
0x1402   : > { %v3908_v23 = vadd.f32 %v4110_v21, %v3900_v22 }
0x1404   : > { %3909 = vst.msk [vmem:[%s771_s14] sm:$0xff] %vm791_vm1, %v3908_v23 }
0x1405   : > { %4698 = shalt.err (!%p4695_p2)
}
0x1406   : > { %s4699_s7 = scalar_lea.hbm %s5482_s10, 128  ;;  %s4703_s6 = scalar_lea.hbm %s5623_s9, 256 }
0x1407   : > { %p4700_p8 = scmp.ne.s32.totalorder %s5482_s10, %s4699_s7  ;;  %p4704_p11 = scmp.lt.u32.totalorder %s5482_s10, %s5623_s9 }
0x1408   : > { %p4705_p1 = scmp.lt.u32.totalorder %s4703_s6, %s4699_s7  ;;  %p4707_p5 = scmp.lt.u32.totalorder %s4699_s7, %s5482_s10 }
0x1409   : > { %p4701_p4 = pnand %p4700_p8, %p5624_p7 }
0x140a   : > { %p4706_p6 = por %p4705_p1, %p4704_p11 }
0x140b   : > { %p4702_p10 = pneg %p4701_p4 }
0x140c   : > { %p4708_p9 = por %p4707_p5, %p4706_p6 }
0x140e   : > { %p4709_p12 = pnand %p4708_p9, %p4702_p10 }
0x1410   : > { %4712 = shalt.err (!%p4709_p12)
}
0x1411   : > { %4421 = dma.vmem_to_hbm [thread:$0]  (%p5624_p7), %s5484_s24, 128, %s5482_s10, %s3911_s13  }
0x1412 PF: > { %s3936_s26 = sand.u32 1, %s4747_s3   ;;  %p5625_p3 = scmp.ne.s32.totalorder %s5596_s27, 0 }
0x1413   : > { %p5626_p13 = scmp.ge.s32.totalorder %s4759_s30, 2  ;;  %s3937_s14 = scalar_lea.sflag [#allocation4], %s3936_s26 }
0x1415   : > { %p4441_p0 = pnand %p5626_p13, %p5625_p3 }
0x1417   : > { %4742 = dma.done.wait (!%p4441_p0), %s3937_s14, 128  }
0x1418   : > { %4744 = vsyncadd (!%p4441_p0), %s3937_s14, 4294967168  ;;  %p37_p2 = scmp.ge.s32.totalorder %s5049_s5, 4   ;;  %s5627_s3 = smov %s4751_s28 }
0x1419   : > { %s5628_s28 = smov %s4755_s29  ;;  %s5629_s29 = smov %s5060_s22 }
0x141a   : > { %s5630_s30 = smov %s5049_s5  ;;  %39 = sbr.rel (!%p37_p2) target bundleno = 27 (0x1b), region = 172 }
0x1421   :  { %3942 = vsyncpa [#allocation3], 1 }
0x1422   :  { %3944 = vsyncpa [#allocation3 + $0x1], 1 }
0x1423   :  { %3945 = vsyncpa [#allocation6], 1 }
0x1424   :  { %3946 = vsyncpa [#allocation9], 1 }
0x1425   :  { %3947 = vsyncpa [#allocation4], 1 }
0x1426   :  { %3949 = vsyncpa [#allocation4 + $0x1], 1 }

</bundles_post_ra>
